<compile_context>
chip_gen: v5e
topology: v5e:2x2
jax: 0.10.0
libtpu: 0.0.40
codegen_flags: <defaults>
</compile_context>

<pallas_src>
import functools

import jax
import jax.numpy as jnp
from jax import lax
from jax.experimental import pallas as pl
from jax.experimental.pallas import tpu as pltpu


def _round_up(x, m):
    return ((x + m - 1) // m) * m


def _gru_seq_kernel(gi_ref, h0_ref, w_h_ref, b_hn_ref, out_ref, h_last_ref, h_sc,
                    *, hp, block_t, seq_len, mask_tail):
    """Recurrent part of the GRU. grid = (batch_tiles, seq_blocks), seq innermost."""
    tb = pl.program_id(1)

    # Load the initial state into the resident f32 carry at the first seq block
    # of each batch tile (seq is the innermost grid axis; scratch is per-core).
    @pl.when(tb == 0)
    def _init():
        h_sc[...] = h0_ref[...]

    bt = h_sc.shape[0]
    cd = w_h_ref.dtype
    # Hoist the (1, Hp) -> (bt, Hp) bias broadcast out of the timestep loop
    # (JAX does not CSE broadcast_in_dim).
    b_hn = jnp.broadcast_to(b_hn_ref[...], (bt, hp))

    def step(t, h):
        gi = gi_ref[t]                                   # (bt, 3Hp) f32, x-side done
        gh = jnp.dot(h.astype(cd), w_h_ref[...],         # single per-step MXU pass
                     preferred_element_type=jnp.float32)
        r = jax.nn.sigmoid(gi[:, 0:hp] + gh[:, 0:hp])
        z = jax.nn.sigmoid(gi[:, hp:2 * hp] + gh[:, hp:2 * hp])
        n = jnp.tanh(gi[:, 2 * hp:3 * hp] + r * (gh[:, 2 * hp:3 * hp] + b_hn))
        h_new = n + z * (h - n)                          # == (1 - z) * n + z * h
        if mask_tail:                                    # static: only if T was padded
            valid = (tb * block_t + t) < seq_len
            h_new = jnp.where(valid, h_new, h)
        out_ref[t] = h_new.astype(out_ref.dtype)
        return h_new

    h = lax.fori_loop(0, block_t, step, h_sc[...], unroll=True)
    h_sc[...] = h
    h_last_ref[...] = h.astype(h_last_ref.dtype)


@jax.jit
def _gru_seq(xs, h0, w_x, b_x, w_h, b_hn):
    """Full sequence: xs (T, B, I), h0 (B, H) -> (out (T, B, H), h_last (B, H) f32)."""
    T, B, I = xs.shape
    H = h0.shape[1]
    Ip = w_x.shape[0]
    Hp = w_h.shape[0]
    pd = w_x.dtype
    out_dtype = xs.dtype

    # ---- batch tiling (f32 sublane multiple; "parallel" axis -> v7x 2-TC sharding)
    Bp = _round_up(max(B, 8), 8)
    bt = Bp if Bp <= 128 else 128
    Bp = _round_up(Bp, bt)
    nb = Bp // bt

    # ---- timestep blocking
    Tt = min(T, 16)
    Tp = _round_up(T, Tt)
    nt = Tp // Tt
    mask_tail = Tp != T

    # ---- phase 1: input projection hoisted out of the recurrence (plain XLA,
    # one big matmul with M = Tp*Bp, not on the sequential critical path).
    # xs is cast to the param dtype once, here.
    xs_p = jnp.zeros((Tp, Bp, Ip), pd).at[:T, :B, :I].set(xs.astype(pd))
    gi = jnp.dot(xs_p.reshape(Tp * Bp, Ip), w_x,
                 preferred_element_type=jnp.float32) + b_x
    gi = gi.reshape(Tp, Bp, 3 * Hp)

    h0_p = jnp.zeros((Bp, Hp), jnp.float32).at[:B, :H].set(h0.astype(jnp.float32))

    # ---- explicit VMEM budget (floor at default scoped limit, cap under v7x 64 MiB)
    w_isz = jnp.dtype(pd).itemsize
    o_isz = jnp.dtype(out_dtype).itemsize
    vmem_bytes = (
        Hp * 3 * Hp * w_isz            # resident recurrent weights (Buffered(1))
        + Hp * 4 + bt * Hp * 4         # b_hn + h0 blocks (Buffered(1))
        + 2 * Tt * bt * 3 * Hp * 4     # gi blocks (double-buffered)
        + 2 * Tt * bt * Hp * o_isz     # out blocks (double-buffered)
        + bt * Hp * 4                  # h_last block
        + bt * Hp * 4                  # f32 carry scratch
    )
    vmem_limit = int(min(max(2 * vmem_bytes, 32 << 20), 56 << 20))

    kernel = functools.partial(_gru_seq_kernel, hp=Hp, block_t=Tt,
                               seq_len=T, mask_tail=mask_tail)

    # ---- phase 2: sequential recurrence, one pallas_call.
    # NOTE: seq axis MUST stay innermost ("arbitrary") for the scratch carry.
    out, h_last = pl.pallas_call(
        kernel,
        out_shape=(jax.ShapeDtypeStruct((Tp, Bp, Hp), out_dtype),
                   jax.ShapeDtypeStruct((Bp, Hp), jnp.float32)),
        grid_spec=pltpu.PrefetchScalarGridSpec(
            num_scalar_prefetch=0,
            grid=(nb, nt),
            in_specs=[
                # precomputed input-side pre-activations: Tt timesteps per grid step
                pl.BlockSpec((Tt, bt, 3 * Hp), lambda b, t: (t, b, 0)),
                # initial state: read once per batch tile -> no double buffer
                pl.BlockSpec((bt, Hp), lambda b, t: (b, 0),
                             pipeline_mode=pl.Buffered(1)),
                # recurrent weights / n-gate hidden bias: constant index map ->
                # DMA'd once, single-buffered, resident in VMEM for the whole call
                pl.BlockSpec((Hp, 3 * Hp), lambda b, t: (0, 0),
                             pipeline_mode=pl.Buffered(1)),
                pl.BlockSpec((1, Hp), lambda b, t: (0, 0),
                             pipeline_mode=pl.Buffered(1)),
            ],
            out_specs=(
                pl.BlockSpec((Tt, bt, Hp), lambda b, t: (t, b, 0)),
                # final state: constant across seq axis -> written back once
                pl.BlockSpec((bt, Hp), lambda b, t: (b, 0)),
            ),
            scratch_shapes=[pltpu.VMEM((bt, Hp), jnp.float32)],   # f32 recurrent carry
        ),
        compiler_params=pltpu.CompilerParams(
            dimension_semantics=("parallel", "arbitrary"),
            vmem_limit_bytes=vmem_limit),
    )(gi, h0_p, w_h, b_hn)

    return out[:T, :B, :H], h_last[:B, :H]


class StatefulGRUCell:
    """Python-side stateful wrapper matching the PyTorch module's behavior.

    `__call__(x)` is the torch-style single-step forward (state carried across
    calls).  `forward_sequence(xs)` is the fused fast path: input projection as
    one big matmul + one pallas_call for the whole recurrence.
    """

    def __init__(self, input_size, hidden_size, bias=True, key=None,
                 param_dtype=jnp.float32):
        self.input_size = input_size
        self.hidden_size = hidden_size
        self.param_dtype = param_dtype
        self._state = None
        if key is None:
            key = jax.random.PRNGKey(0)
        k1, k2, k3, k4 = jax.random.split(key, 4)
        stdv = 1.0 / (hidden_size ** 0.5)
        # torch.nn.GRUCell parameter shapes: weight_ih (3H, I), weight_hh (3H, H),
        # bias_ih / bias_hh (3H,); rows ordered [r | z | n].
        self.weight_ih = jax.random.uniform(
            k1, (3 * hidden_size, input_size), jnp.float32, -stdv, stdv)
        self.weight_hh = jax.random.uniform(
            k2, (3 * hidden_size, hidden_size), jnp.float32, -stdv, stdv)
        if bias:
            self.bias_ih = jax.random.uniform(
                k3, (3 * hidden_size,), jnp.float32, -stdv, stdv)
            self.bias_hh = jax.random.uniform(
                k4, (3 * hidden_size,), jnp.float32, -stdv, stdv)
        else:
            self.bias_ih = jnp.zeros((3 * hidden_size,), jnp.float32)
            self.bias_hh = jnp.zeros((3 * hidden_size,), jnp.float32)
        self._pack_params()

    def _pack_params(self):
        """Pre-transpose / pad / fuse parameters ONCE into the kernel layout."""
        H, I = self.hidden_size, self.input_size
        Hp, Ip = _round_up(H, 128), _round_up(I, 128)
        pd = self.param_dtype
        wih, whh = self.weight_ih, self.weight_hh   # (3H, I), (3H, H)

        # Input-side weights (Ip, 3Hp), columns [r | z | n]; used in the hoisted
        # pre-projection (phase 1), never resident in the recurrent kernel.
        w_x = jnp.zeros((Ip, 3 * Hp), pd)
        w_x = w_x.at[:I, 0:H].set(wih[0:H].T.astype(pd))
        w_x = w_x.at[:I, Hp:Hp + H].set(wih[H:2 * H].T.astype(pd))
        w_x = w_x.at[:I, 2 * Hp:2 * Hp + H].set(wih[2 * H:3 * H].T.astype(pd))

        # Fused input-side biases: r/z get b_i*+b_h* folded; n keeps only b_in
        # (b_hn must stay inside r * (h @ W_hn + b_hn)).
        b_x = jnp.zeros((1, 3 * Hp), jnp.float32)
        b_x = b_x.at[0, 0:H].set(self.bias_ih[0:H] + self.bias_hh[0:H])
        b_x = b_x.at[0, Hp:Hp + H].set(self.bias_ih[H:2 * H] + self.bias_hh[H:2 * H])
        b_x = b_x.at[0, 2 * Hp:2 * Hp + H].set(self.bias_ih[2 * H:3 * H])

        # Recurrent weights (Hp, 3Hp), columns [r | z | n] — the only matmul on
        # the sequential critical path.
        w_h = jnp.zeros((Hp, 3 * Hp), pd)
        w_h = w_h.at[:H, 0:H].set(whh[0:H].T.astype(pd))
        w_h = w_h.at[:H, Hp:Hp + H].set(whh[H:2 * H].T.astype(pd))
        w_h = w_h.at[:H, 2 * Hp:2 * Hp + H].set(whh[2 * H:3 * H].T.astype(pd))

        b_hn = jnp.zeros((1, Hp), jnp.float32)
        b_hn = b_hn.at[0, :H].set(self.bias_hh[2 * H:3 * H])

        self._w_x, self._b_x, self._w_h, self._b_hn = w_x, b_x, w_h, b_hn

    def reset(self):
        self._state = None

    @property
    def state(self):
        return self._state

    @state.setter
    def state(self, value):
        self._state = value

    def forward_sequence(self, xs):
        """xs: (T, B, input_size) -> (T, B, hidden_size); state updated to last h."""
        B = xs.shape[1]
        if self._state is None:
            self._state = jnp.zeros((B, self.hidden_size), jnp.float32)
        out, h_last = _gru_seq(xs, self._state, self._w_x, self._b_x,
                               self._w_h, self._b_hn)
        self._state = h_last          # f32 carry across calls (no dtype round-trip)
        return out

    def __call__(self, x):
        """Single-step forward (torch semantics): x (B, input_size) -> (B, hidden)."""
        return self.forward_sequence(x[None])[0]


def _gru_cell_ref(x, h, w_ih, w_hh, b_ih, b_hh):
    """Pure-JAX reference of torch.nn.GRUCell (one step)."""
    gi = x @ w_ih.T + b_ih
    gh = h @ w_hh.T + b_hh
    H = h.shape[-1]
    i_r, i_z, i_n = gi[:, :H], gi[:, H:2 * H], gi[:, 2 * H:]
    h_r, h_z, h_n = gh[:, :H], gh[:, H:2 * H], gh[:, 2 * H:]
    r = jax.nn.sigmoid(i_r + h_r)
    z = jax.nn.sigmoid(i_z + h_z)
    n = jnp.tanh(i_n + r * h_n)
    return (1.0 - z) * n + z * h


if __name__ == "__main__":
    batch, input_size, hidden_size, seq = 2, 16, 32, 8

    key = jax.random.PRNGKey(0)
    k_param, k_x = jax.random.split(key)
    xs = jax.random.normal(k_x, (seq, batch, input_size), jnp.float32)

    # Fused path: x-projection hoisted, whole recurrence in one pallas_call.
    cell = StatefulGRUCell(input_size, hidden_size, bias=True, key=k_param)
    outs = jax.block_until_ready(cell.forward_sequence(xs))   # (seq, B, H)

    # Stateful single-step API (matches the torch module's forward()).
    cell2 = StatefulGRUCell(input_size, hidden_size, bias=True, key=k_param)
    last = None
    for t in range(seq):
        last = cell2(xs[t])
    last = jax.block_until_ready(last)

    # Pure-JAX reference over the sequence.
    h_ref = jnp.zeros((batch, hidden_size), jnp.float32)
    refs = []
    for t in range(seq):
        h_ref = _gru_cell_ref(xs[t], h_ref, cell.weight_ih, cell.weight_hh,
                              cell.bias_ih, cell.bias_hh)
        refs.append(h_ref)
    refs = jnp.stack(refs)

    assert outs.shape == (seq, batch, hidden_size)
    assert jnp.allclose(outs, refs, atol=1e-5, rtol=1e-5), "fused seq mismatch"
    assert jnp.allclose(last, refs[-1], atol=1e-5, rtol=1e-5), "stepwise mismatch"
    assert jnp.allclose(cell.state, refs[-1], atol=1e-5, rtol=1e-5), "state mismatch"
    assert jnp.allclose(cell2.state, refs[-1], atol=1e-5, rtol=1e-5), "step-state mismatch"
    print("KERNEL_OK")
</pallas_src>

<mosaic_0001>
module attributes {stable_mosaic.version = 11 : i64} {
  func.func @_gru_seq_kernel(%arg0: i32, %arg1: i32, %arg2: memref<8x8x384xf32, #tpu.memory_space<vmem>>, %arg3: memref<8x128xf32, #tpu.memory_space<vmem>>, %arg4: memref<128x384xf32, #tpu.memory_space<vmem>>, %arg5: memref<1x128xf32, #tpu.memory_space<vmem>>, %arg6: memref<8x8x128xf32, #tpu.memory_space<vmem>>, %arg7: memref<8x128xf32, #tpu.memory_space<vmem>>, %arg8: memref<8x128xf32, #tpu.memory_space<vmem>>) attributes {dimension_semantics = [#tpu.dimension_semantics<parallel>, #tpu.dimension_semantics<arbitrary>], iteration_bounds = array<i64: 1, 1>, scalar_prefetch = 0 : i64, scratch_operands = 1 : i64, tpu.core_type = #tpu.core_type<tc>, window_params = [{transform_indices = @transform_0, window_bounds = array<i64: 8, 8, 384>}, {pipeline_mode = #tpu.pipeline_mode<synchronous>, transform_indices = @transform_1, window_bounds = array<i64: 8, 128>}, {pipeline_mode = #tpu.pipeline_mode<synchronous>, transform_indices = @transform_2, window_bounds = array<i64: 128, 384>}, {pipeline_mode = #tpu.pipeline_mode<synchronous>, transform_indices = @transform_3, window_bounds = array<i64: 1, 128>}, {transform_indices = @transform_4, window_bounds = array<i64: 8, 8, 128>}, {transform_indices = @transform_5, window_bounds = array<i64: 8, 128>}]} {
    %c0_i32 = arith.constant 0 : i32
    %0 = arith.cmpi eq, %arg1, %c0_i32 : i32
    %1 = arith.extui %0 : i1 to i32
    %c0_i32_0 = arith.constant 0 : i32
    %2 = arith.cmpi ne, %1, %c0_i32_0 : i32
    scf.if %2 {
      %c0_80 = arith.constant 0 : index
      %c0_81 = arith.constant 0 : index
      %281 = vector.load %arg3[%c0_80, %c0_81] : memref<8x128xf32, #tpu.memory_space<vmem>>, vector<8x128xf32>
      %c0_82 = arith.constant 0 : index
      %c0_83 = arith.constant 0 : index
      %282 = vector.load %arg8[%c0_82, %c0_83] : memref<8x128xf32, #tpu.memory_space<vmem>>, vector<8x128xf32>
      tpu.vector_store %arg8[%c0_82, %c0_83], %281 {strides = array<i32>} : memref<8x128xf32, #tpu.memory_space<vmem>>, vector<8x128xf32>,
    } else {
    }
    %c0 = arith.constant 0 : index
    %c0_1 = arith.constant 0 : index
    %3 = vector.load %arg5[%c0, %c0_1] : memref<1x128xf32, #tpu.memory_space<vmem>>, vector<1x128xf32>
    %4 = vector.shape_cast %3 : vector<1x128xf32> to vector<1x128xf32>
    %5 = vector.broadcast %4 : vector<1x128xf32> to vector<8x128xf32>
    %c0_2 = arith.constant 0 : index
    %c0_3 = arith.constant 0 : index
    %6 = vector.load %arg8[%c0_2, %c0_3] : memref<8x128xf32, #tpu.memory_space<vmem>>, vector<8x128xf32>
    %c0_i32_4 = arith.constant 0 : i32
    %7 = arith.index_cast %c0_i32_4 : i32 to index
    %c0_5 = arith.constant 0 : index
    %c0_6 = arith.constant 0 : index
    %8 = vector.load %arg2[%7, %c0_5, %c0_6] : memref<8x8x384xf32, #tpu.memory_space<vmem>>, vector<1x8x384xf32>
    %9 = vector.shape_cast %8 : vector<1x8x384xf32> to vector<8x384xf32>
    %c0_7 = arith.constant 0 : index
    %c0_8 = arith.constant 0 : index
    %10 = vector.load %arg4[%c0_7, %c0_8] : memref<128x384xf32, #tpu.memory_space<vmem>>, vector<128x384xf32>
    %cst = arith.constant dense<0.000000e+00> : vector<8x384xf32>
    %11 = tpu.matmul %6, %10, %cst {dimension_numbers = #tpu.dot_dimension_numbers<[1], [0], [0], [1], [0, 0, 1, 1], [], []>} : vector<8x128xf32>, vector<128x384xf32>, vector<8x384xf32> -> vector<8x384xf32>
    %12 = vector.extract_strided_slice %9 {offsets = [0, 0], sizes = [8, 128], strides = [1, 1]} : vector<8x384xf32> to vector<8x128xf32>
    %13 = vector.extract_strided_slice %11 {offsets = [0, 0], sizes = [8, 128], strides = [1, 1]} : vector<8x384xf32> to vector<8x128xf32>
    %14 = arith.addf %12, %13 : vector<8x128xf32>
    %15 = arith.negf %14 : vector<8x128xf32>
    %16 = math.exp %15 : vector<8x128xf32>
    %cst_9 = arith.constant 1.000000e+00 : f32
    %17 = vector.broadcast %cst_9 : f32 to vector<8x128xf32>
    %18 = arith.addf %17, %16 : vector<8x128xf32>
    %19 = arith.divf %17, %18 : vector<8x128xf32>
    %20 = vector.extract_strided_slice %9 {offsets = [0, 128], sizes = [8, 128], strides = [1, 1]} : vector<8x384xf32> to vector<8x128xf32>
    %21 = vector.extract_strided_slice %11 {offsets = [0, 128], sizes = [8, 128], strides = [1, 1]} : vector<8x384xf32> to vector<8x128xf32>
    %22 = arith.addf %20, %21 : vector<8x128xf32>
    %23 = arith.negf %22 : vector<8x128xf32>
    %24 = math.exp %23 : vector<8x128xf32>
    %cst_10 = arith.constant 1.000000e+00 : f32
    %25 = vector.broadcast %cst_10 : f32 to vector<8x128xf32>
    %26 = arith.addf %25, %24 : vector<8x128xf32>
    %27 = arith.divf %25, %26 : vector<8x128xf32>
    %28 = vector.extract_strided_slice %9 {offsets = [0, 256], sizes = [8, 128], strides = [1, 1]} : vector<8x384xf32> to vector<8x128xf32>
    %29 = vector.extract_strided_slice %11 {offsets = [0, 256], sizes = [8, 128], strides = [1, 1]} : vector<8x384xf32> to vector<8x128xf32>
    %30 = arith.addf %29, %5 : vector<8x128xf32>
    %31 = arith.mulf %19, %30 : vector<8x128xf32>
    %32 = arith.addf %28, %31 : vector<8x128xf32>
    %33 = math.tanh %32 : vector<8x128xf32>
    %34 = arith.subf %6, %33 : vector<8x128xf32>
    %35 = arith.mulf %27, %34 : vector<8x128xf32>
    %36 = arith.addf %33, %35 : vector<8x128xf32>
    %37 = arith.index_cast %c0_i32_4 : i32 to index
    %c0_11 = arith.constant 0 : index
    %c0_12 = arith.constant 0 : index
    %38 = vector.load %arg6[%37, %c0_11, %c0_12] : memref<8x8x128xf32, #tpu.memory_space<vmem>>, vector<1x8x128xf32>
    %39 = vector.shape_cast %38 : vector<1x8x128xf32> to vector<8x128xf32>
    %40 = vector.shape_cast %36 : vector<8x128xf32> to vector<1x8x128xf32>
    tpu.vector_store %arg6[%37, %c0_11, %c0_12], %40 {strides = array<i32>} : memref<8x8x128xf32, #tpu.memory_space<vmem>>, vector<1x8x128xf32>,
    %c1_i32 = arith.constant 1 : i32
    %41 = arith.index_cast %c1_i32 : i32 to index
    %c0_13 = arith.constant 0 : index
    %c0_14 = arith.constant 0 : index
    %42 = vector.load %arg2[%41, %c0_13, %c0_14] : memref<8x8x384xf32, #tpu.memory_space<vmem>>, vector<1x8x384xf32>
    %43 = vector.shape_cast %42 : vector<1x8x384xf32> to vector<8x384xf32>
    %c0_15 = arith.constant 0 : index
    %c0_16 = arith.constant 0 : index
    %44 = vector.load %arg4[%c0_15, %c0_16] : memref<128x384xf32, #tpu.memory_space<vmem>>, vector<128x384xf32>
    %cst_17 = arith.constant dense<0.000000e+00> : vector<8x384xf32>
    %45 = tpu.matmul %36, %44, %cst_17 {dimension_numbers = #tpu.dot_dimension_numbers<[1], [0], [0], [1], [0, 0, 1, 1], [], []>} : vector<8x128xf32>, vector<128x384xf32>, vector<8x384xf32> -> vector<8x384xf32>
    %46 = vector.extract_strided_slice %43 {offsets = [0, 0], sizes = [8, 128], strides = [1, 1]} : vector<8x384xf32> to vector<8x128xf32>
    %47 = vector.extract_strided_slice %45 {offsets = [0, 0], sizes = [8, 128], strides = [1, 1]} : vector<8x384xf32> to vector<8x128xf32>
    %48 = arith.addf %46, %47 : vector<8x128xf32>
    %49 = arith.negf %48 : vector<8x128xf32>
    %50 = math.exp %49 : vector<8x128xf32>
    %cst_18 = arith.constant 1.000000e+00 : f32
    %51 = vector.broadcast %cst_18 : f32 to vector<8x128xf32>
    %52 = arith.addf %51, %50 : vector<8x128xf32>
    %53 = arith.divf %51, %52 : vector<8x128xf32>
    %54 = vector.extract_strided_slice %43 {offsets = [0, 128], sizes = [8, 128], strides = [1, 1]} : vector<8x384xf32> to vector<8x128xf32>
    %55 = vector.extract_strided_slice %45 {offsets = [0, 128], sizes = [8, 128], strides = [1, 1]} : vector<8x384xf32> to vector<8x128xf32>
    %56 = arith.addf %54, %55 : vector<8x128xf32>
    %57 = arith.negf %56 : vector<8x128xf32>
    %58 = math.exp %57 : vector<8x128xf32>
    %cst_19 = arith.constant 1.000000e+00 : f32
    %59 = vector.broadcast %cst_19 : f32 to vector<8x128xf32>
    %60 = arith.addf %59, %58 : vector<8x128xf32>
    %61 = arith.divf %59, %60 : vector<8x128xf32>
    %62 = vector.extract_strided_slice %43 {offsets = [0, 256], sizes = [8, 128], strides = [1, 1]} : vector<8x384xf32> to vector<8x128xf32>
    %63 = vector.extract_strided_slice %45 {offsets = [0, 256], sizes = [8, 128], strides = [1, 1]} : vector<8x384xf32> to vector<8x128xf32>
    %64 = arith.addf %63, %5 : vector<8x128xf32>
    %65 = arith.mulf %53, %64 : vector<8x128xf32>
    %66 = arith.addf %62, %65 : vector<8x128xf32>
    %67 = math.tanh %66 : vector<8x128xf32>
    %68 = arith.subf %36, %67 : vector<8x128xf32>
    %69 = arith.mulf %61, %68 : vector<8x128xf32>
    %70 = arith.addf %67, %69 : vector<8x128xf32>
    %71 = arith.index_cast %c1_i32 : i32 to index
    %c0_20 = arith.constant 0 : index
    %c0_21 = arith.constant 0 : index
    %72 = vector.load %arg6[%71, %c0_20, %c0_21] : memref<8x8x128xf32, #tpu.memory_space<vmem>>, vector<1x8x128xf32>
    %73 = vector.shape_cast %72 : vector<1x8x128xf32> to vector<8x128xf32>
    %74 = vector.shape_cast %70 : vector<8x128xf32> to vector<1x8x128xf32>
    tpu.vector_store %arg6[%71, %c0_20, %c0_21], %74 {strides = array<i32>} : memref<8x8x128xf32, #tpu.memory_space<vmem>>, vector<1x8x128xf32>,
    %c2_i32 = arith.constant 2 : i32
    %75 = arith.index_cast %c2_i32 : i32 to index
    %c0_22 = arith.constant 0 : index
    %c0_23 = arith.constant 0 : index
    %76 = vector.load %arg2[%75, %c0_22, %c0_23] : memref<8x8x384xf32, #tpu.memory_space<vmem>>, vector<1x8x384xf32>
    %77 = vector.shape_cast %76 : vector<1x8x384xf32> to vector<8x384xf32>
    %c0_24 = arith.constant 0 : index
    %c0_25 = arith.constant 0 : index
    %78 = vector.load %arg4[%c0_24, %c0_25] : memref<128x384xf32, #tpu.memory_space<vmem>>, vector<128x384xf32>
    %cst_26 = arith.constant dense<0.000000e+00> : vector<8x384xf32>
    %79 = tpu.matmul %70, %78, %cst_26 {dimension_numbers = #tpu.dot_dimension_numbers<[1], [0], [0], [1], [0, 0, 1, 1], [], []>} : vector<8x128xf32>, vector<128x384xf32>, vector<8x384xf32> -> vector<8x384xf32>
    %80 = vector.extract_strided_slice %77 {offsets = [0, 0], sizes = [8, 128], strides = [1, 1]} : vector<8x384xf32> to vector<8x128xf32>
    %81 = vector.extract_strided_slice %79 {offsets = [0, 0], sizes = [8, 128], strides = [1, 1]} : vector<8x384xf32> to vector<8x128xf32>
    %82 = arith.addf %80, %81 : vector<8x128xf32>
    %83 = arith.negf %82 : vector<8x128xf32>
    %84 = math.exp %83 : vector<8x128xf32>
    %cst_27 = arith.constant 1.000000e+00 : f32
    %85 = vector.broadcast %cst_27 : f32 to vector<8x128xf32>
    %86 = arith.addf %85, %84 : vector<8x128xf32>
    %87 = arith.divf %85, %86 : vector<8x128xf32>
    %88 = vector.extract_strided_slice %77 {offsets = [0, 128], sizes = [8, 128], strides = [1, 1]} : vector<8x384xf32> to vector<8x128xf32>
    %89 = vector.extract_strided_slice %79 {offsets = [0, 128], sizes = [8, 128], strides = [1, 1]} : vector<8x384xf32> to vector<8x128xf32>
    %90 = arith.addf %88, %89 : vector<8x128xf32>
    %91 = arith.negf %90 : vector<8x128xf32>
    %92 = math.exp %91 : vector<8x128xf32>
    %cst_28 = arith.constant 1.000000e+00 : f32
    %93 = vector.broadcast %cst_28 : f32 to vector<8x128xf32>
    %94 = arith.addf %93, %92 : vector<8x128xf32>
    %95 = arith.divf %93, %94 : vector<8x128xf32>
    %96 = vector.extract_strided_slice %77 {offsets = [0, 256], sizes = [8, 128], strides = [1, 1]} : vector<8x384xf32> to vector<8x128xf32>
    %97 = vector.extract_strided_slice %79 {offsets = [0, 256], sizes = [8, 128], strides = [1, 1]} : vector<8x384xf32> to vector<8x128xf32>
    %98 = arith.addf %97, %5 : vector<8x128xf32>
    %99 = arith.mulf %87, %98 : vector<8x128xf32>
    %100 = arith.addf %96, %99 : vector<8x128xf32>
    %101 = math.tanh %100 : vector<8x128xf32>
    %102 = arith.subf %70, %101 : vector<8x128xf32>
    %103 = arith.mulf %95, %102 : vector<8x128xf32>
    %104 = arith.addf %101, %103 : vector<8x128xf32>
    %105 = arith.index_cast %c2_i32 : i32 to index
    %c0_29 = arith.constant 0 : index
    %c0_30 = arith.constant 0 : index
    %106 = vector.load %arg6[%105, %c0_29, %c0_30] : memref<8x8x128xf32, #tpu.memory_space<vmem>>, vector<1x8x128xf32>
    %107 = vector.shape_cast %106 : vector<1x8x128xf32> to vector<8x128xf32>
    %108 = vector.shape_cast %104 : vector<8x128xf32> to vector<1x8x128xf32>
    tpu.vector_store %arg6[%105, %c0_29, %c0_30], %108 {strides = array<i32>} : memref<8x8x128xf32, #tpu.memory_space<vmem>>, vector<1x8x128xf32>,
    %c3_i32 = arith.constant 3 : i32
    %109 = arith.index_cast %c3_i32 : i32 to index
    %c0_31 = arith.constant 0 : index
    %c0_32 = arith.constant 0 : index
    %110 = vector.load %arg2[%109, %c0_31, %c0_32] : memref<8x8x384xf32, #tpu.memory_space<vmem>>, vector<1x8x384xf32>
    %111 = vector.shape_cast %110 : vector<1x8x384xf32> to vector<8x384xf32>
    %c0_33 = arith.constant 0 : index
    %c0_34 = arith.constant 0 : index
    %112 = vector.load %arg4[%c0_33, %c0_34] : memref<128x384xf32, #tpu.memory_space<vmem>>, vector<128x384xf32>
    %cst_35 = arith.constant dense<0.000000e+00> : vector<8x384xf32>
    %113 = tpu.matmul %104, %112, %cst_35 {dimension_numbers = #tpu.dot_dimension_numbers<[1], [0], [0], [1], [0, 0, 1, 1], [], []>} : vector<8x128xf32>, vector<128x384xf32>, vector<8x384xf32> -> vector<8x384xf32>
    %114 = vector.extract_strided_slice %111 {offsets = [0, 0], sizes = [8, 128], strides = [1, 1]} : vector<8x384xf32> to vector<8x128xf32>
    %115 = vector.extract_strided_slice %113 {offsets = [0, 0], sizes = [8, 128], strides = [1, 1]} : vector<8x384xf32> to vector<8x128xf32>
    %116 = arith.addf %114, %115 : vector<8x128xf32>
    %117 = arith.negf %116 : vector<8x128xf32>
    %118 = math.exp %117 : vector<8x128xf32>
    %cst_36 = arith.constant 1.000000e+00 : f32
    %119 = vector.broadcast %cst_36 : f32 to vector<8x128xf32>
    %120 = arith.addf %119, %118 : vector<8x128xf32>
    %121 = arith.divf %119, %120 : vector<8x128xf32>
    %122 = vector.extract_strided_slice %111 {offsets = [0, 128], sizes = [8, 128], strides = [1, 1]} : vector<8x384xf32> to vector<8x128xf32>
    %123 = vector.extract_strided_slice %113 {offsets = [0, 128], sizes = [8, 128], strides = [1, 1]} : vector<8x384xf32> to vector<8x128xf32>
    %124 = arith.addf %122, %123 : vector<8x128xf32>
    %125 = arith.negf %124 : vector<8x128xf32>
    %126 = math.exp %125 : vector<8x128xf32>
    %cst_37 = arith.constant 1.000000e+00 : f32
    %127 = vector.broadcast %cst_37 : f32 to vector<8x128xf32>
    %128 = arith.addf %127, %126 : vector<8x128xf32>
    %129 = arith.divf %127, %128 : vector<8x128xf32>
    %130 = vector.extract_strided_slice %111 {offsets = [0, 256], sizes = [8, 128], strides = [1, 1]} : vector<8x384xf32> to vector<8x128xf32>
    %131 = vector.extract_strided_slice %113 {offsets = [0, 256], sizes = [8, 128], strides = [1, 1]} : vector<8x384xf32> to vector<8x128xf32>
    %132 = arith.addf %131, %5 : vector<8x128xf32>
    %133 = arith.mulf %121, %132 : vector<8x128xf32>
    %134 = arith.addf %130, %133 : vector<8x128xf32>
    %135 = math.tanh %134 : vector<8x128xf32>
    %136 = arith.subf %104, %135 : vector<8x128xf32>
    %137 = arith.mulf %129, %136 : vector<8x128xf32>
    %138 = arith.addf %135, %137 : vector<8x128xf32>
    %139 = arith.index_cast %c3_i32 : i32 to index
    %c0_38 = arith.constant 0 : index
    %c0_39 = arith.constant 0 : index
    %140 = vector.load %arg6[%139, %c0_38, %c0_39] : memref<8x8x128xf32, #tpu.memory_space<vmem>>, vector<1x8x128xf32>
    %141 = vector.shape_cast %140 : vector<1x8x128xf32> to vector<8x128xf32>
    %142 = vector.shape_cast %138 : vector<8x128xf32> to vector<1x8x128xf32>
    tpu.vector_store %arg6[%139, %c0_38, %c0_39], %142 {strides = array<i32>} : memref<8x8x128xf32, #tpu.memory_space<vmem>>, vector<1x8x128xf32>,
    %c4_i32 = arith.constant 4 : i32
    %143 = arith.index_cast %c4_i32 : i32 to index
    %c0_40 = arith.constant 0 : index
    %c0_41 = arith.constant 0 : index
    %144 = vector.load %arg2[%143, %c0_40, %c0_41] : memref<8x8x384xf32, #tpu.memory_space<vmem>>, vector<1x8x384xf32>
    %145 = vector.shape_cast %144 : vector<1x8x384xf32> to vector<8x384xf32>
    %c0_42 = arith.constant 0 : index
    %c0_43 = arith.constant 0 : index
    %146 = vector.load %arg4[%c0_42, %c0_43] : memref<128x384xf32, #tpu.memory_space<vmem>>, vector<128x384xf32>
    %cst_44 = arith.constant dense<0.000000e+00> : vector<8x384xf32>
    %147 = tpu.matmul %138, %146, %cst_44 {dimension_numbers = #tpu.dot_dimension_numbers<[1], [0], [0], [1], [0, 0, 1, 1], [], []>} : vector<8x128xf32>, vector<128x384xf32>, vector<8x384xf32> -> vector<8x384xf32>
    %148 = vector.extract_strided_slice %145 {offsets = [0, 0], sizes = [8, 128], strides = [1, 1]} : vector<8x384xf32> to vector<8x128xf32>
    %149 = vector.extract_strided_slice %147 {offsets = [0, 0], sizes = [8, 128], strides = [1, 1]} : vector<8x384xf32> to vector<8x128xf32>
    %150 = arith.addf %148, %149 : vector<8x128xf32>
    %151 = arith.negf %150 : vector<8x128xf32>
    %152 = math.exp %151 : vector<8x128xf32>
    %cst_45 = arith.constant 1.000000e+00 : f32
    %153 = vector.broadcast %cst_45 : f32 to vector<8x128xf32>
    %154 = arith.addf %153, %152 : vector<8x128xf32>
    %155 = arith.divf %153, %154 : vector<8x128xf32>
    %156 = vector.extract_strided_slice %145 {offsets = [0, 128], sizes = [8, 128], strides = [1, 1]} : vector<8x384xf32> to vector<8x128xf32>
    %157 = vector.extract_strided_slice %147 {offsets = [0, 128], sizes = [8, 128], strides = [1, 1]} : vector<8x384xf32> to vector<8x128xf32>
    %158 = arith.addf %156, %157 : vector<8x128xf32>
    %159 = arith.negf %158 : vector<8x128xf32>
    %160 = math.exp %159 : vector<8x128xf32>
    %cst_46 = arith.constant 1.000000e+00 : f32
    %161 = vector.broadcast %cst_46 : f32 to vector<8x128xf32>
    %162 = arith.addf %161, %160 : vector<8x128xf32>
    %163 = arith.divf %161, %162 : vector<8x128xf32>
    %164 = vector.extract_strided_slice %145 {offsets = [0, 256], sizes = [8, 128], strides = [1, 1]} : vector<8x384xf32> to vector<8x128xf32>
    %165 = vector.extract_strided_slice %147 {offsets = [0, 256], sizes = [8, 128], strides = [1, 1]} : vector<8x384xf32> to vector<8x128xf32>
    %166 = arith.addf %165, %5 : vector<8x128xf32>
    %167 = arith.mulf %155, %166 : vector<8x128xf32>
    %168 = arith.addf %164, %167 : vector<8x128xf32>
    %169 = math.tanh %168 : vector<8x128xf32>
    %170 = arith.subf %138, %169 : vector<8x128xf32>
    %171 = arith.mulf %163, %170 : vector<8x128xf32>
    %172 = arith.addf %169, %171 : vector<8x128xf32>
    %173 = arith.index_cast %c4_i32 : i32 to index
    %c0_47 = arith.constant 0 : index
    %c0_48 = arith.constant 0 : index
    %174 = vector.load %arg6[%173, %c0_47, %c0_48] : memref<8x8x128xf32, #tpu.memory_space<vmem>>, vector<1x8x128xf32>
    %175 = vector.shape_cast %174 : vector<1x8x128xf32> to vector<8x128xf32>
    %176 = vector.shape_cast %172 : vector<8x128xf32> to vector<1x8x128xf32>
    tpu.vector_store %arg6[%173, %c0_47, %c0_48], %176 {strides = array<i32>} : memref<8x8x128xf32, #tpu.memory_space<vmem>>, vector<1x8x128xf32>,
    %c5_i32 = arith.constant 5 : i32
    %177 = arith.index_cast %c5_i32 : i32 to index
    %c0_49 = arith.constant 0 : index
    %c0_50 = arith.constant 0 : index
    %178 = vector.load %arg2[%177, %c0_49, %c0_50] : memref<8x8x384xf32, #tpu.memory_space<vmem>>, vector<1x8x384xf32>
    %179 = vector.shape_cast %178 : vector<1x8x384xf32> to vector<8x384xf32>
    %c0_51 = arith.constant 0 : index
    %c0_52 = arith.constant 0 : index
    %180 = vector.load %arg4[%c0_51, %c0_52] : memref<128x384xf32, #tpu.memory_space<vmem>>, vector<128x384xf32>
    %cst_53 = arith.constant dense<0.000000e+00> : vector<8x384xf32>
    %181 = tpu.matmul %172, %180, %cst_53 {dimension_numbers = #tpu.dot_dimension_numbers<[1], [0], [0], [1], [0, 0, 1, 1], [], []>} : vector<8x128xf32>, vector<128x384xf32>, vector<8x384xf32> -> vector<8x384xf32>
    %182 = vector.extract_strided_slice %179 {offsets = [0, 0], sizes = [8, 128], strides = [1, 1]} : vector<8x384xf32> to vector<8x128xf32>
    %183 = vector.extract_strided_slice %181 {offsets = [0, 0], sizes = [8, 128], strides = [1, 1]} : vector<8x384xf32> to vector<8x128xf32>
    %184 = arith.addf %182, %183 : vector<8x128xf32>
    %185 = arith.negf %184 : vector<8x128xf32>
    %186 = math.exp %185 : vector<8x128xf32>
    %cst_54 = arith.constant 1.000000e+00 : f32
    %187 = vector.broadcast %cst_54 : f32 to vector<8x128xf32>
    %188 = arith.addf %187, %186 : vector<8x128xf32>
    %189 = arith.divf %187, %188 : vector<8x128xf32>
    %190 = vector.extract_strided_slice %179 {offsets = [0, 128], sizes = [8, 128], strides = [1, 1]} : vector<8x384xf32> to vector<8x128xf32>
    %191 = vector.extract_strided_slice %181 {offsets = [0, 128], sizes = [8, 128], strides = [1, 1]} : vector<8x384xf32> to vector<8x128xf32>
    %192 = arith.addf %190, %191 : vector<8x128xf32>
    %193 = arith.negf %192 : vector<8x128xf32>
    %194 = math.exp %193 : vector<8x128xf32>
    %cst_55 = arith.constant 1.000000e+00 : f32
    %195 = vector.broadcast %cst_55 : f32 to vector<8x128xf32>
    %196 = arith.addf %195, %194 : vector<8x128xf32>
    %197 = arith.divf %195, %196 : vector<8x128xf32>
    %198 = vector.extract_strided_slice %179 {offsets = [0, 256], sizes = [8, 128], strides = [1, 1]} : vector<8x384xf32> to vector<8x128xf32>
    %199 = vector.extract_strided_slice %181 {offsets = [0, 256], sizes = [8, 128], strides = [1, 1]} : vector<8x384xf32> to vector<8x128xf32>
    %200 = arith.addf %199, %5 : vector<8x128xf32>
    %201 = arith.mulf %189, %200 : vector<8x128xf32>
    %202 = arith.addf %198, %201 : vector<8x128xf32>
    %203 = math.tanh %202 : vector<8x128xf32>
    %204 = arith.subf %172, %203 : vector<8x128xf32>
    %205 = arith.mulf %197, %204 : vector<8x128xf32>
    %206 = arith.addf %203, %205 : vector<8x128xf32>
    %207 = arith.index_cast %c5_i32 : i32 to index
    %c0_56 = arith.constant 0 : index
    %c0_57 = arith.constant 0 : index
    %208 = vector.load %arg6[%207, %c0_56, %c0_57] : memref<8x8x128xf32, #tpu.memory_space<vmem>>, vector<1x8x128xf32>
    %209 = vector.shape_cast %208 : vector<1x8x128xf32> to vector<8x128xf32>
    %210 = vector.shape_cast %206 : vector<8x128xf32> to vector<1x8x128xf32>
    tpu.vector_store %arg6[%207, %c0_56, %c0_57], %210 {strides = array<i32>} : memref<8x8x128xf32, #tpu.memory_space<vmem>>, vector<1x8x128xf32>,
    %c6_i32 = arith.constant 6 : i32
    %211 = arith.index_cast %c6_i32 : i32 to index
    %c0_58 = arith.constant 0 : index
    %c0_59 = arith.constant 0 : index
    %212 = vector.load %arg2[%211, %c0_58, %c0_59] : memref<8x8x384xf32, #tpu.memory_space<vmem>>, vector<1x8x384xf32>
    %213 = vector.shape_cast %212 : vector<1x8x384xf32> to vector<8x384xf32>
    %c0_60 = arith.constant 0 : index
    %c0_61 = arith.constant 0 : index
    %214 = vector.load %arg4[%c0_60, %c0_61] : memref<128x384xf32, #tpu.memory_space<vmem>>, vector<128x384xf32>
    %cst_62 = arith.constant dense<0.000000e+00> : vector<8x384xf32>
    %215 = tpu.matmul %206, %214, %cst_62 {dimension_numbers = #tpu.dot_dimension_numbers<[1], [0], [0], [1], [0, 0, 1, 1], [], []>} : vector<8x128xf32>, vector<128x384xf32>, vector<8x384xf32> -> vector<8x384xf32>
    %216 = vector.extract_strided_slice %213 {offsets = [0, 0], sizes = [8, 128], strides = [1, 1]} : vector<8x384xf32> to vector<8x128xf32>
    %217 = vector.extract_strided_slice %215 {offsets = [0, 0], sizes = [8, 128], strides = [1, 1]} : vector<8x384xf32> to vector<8x128xf32>
    %218 = arith.addf %216, %217 : vector<8x128xf32>
    %219 = arith.negf %218 : vector<8x128xf32>
    %220 = math.exp %219 : vector<8x128xf32>
    %cst_63 = arith.constant 1.000000e+00 : f32
    %221 = vector.broadcast %cst_63 : f32 to vector<8x128xf32>
    %222 = arith.addf %221, %220 : vector<8x128xf32>
    %223 = arith.divf %221, %222 : vector<8x128xf32>
    %224 = vector.extract_strided_slice %213 {offsets = [0, 128], sizes = [8, 128], strides = [1, 1]} : vector<8x384xf32> to vector<8x128xf32>
    %225 = vector.extract_strided_slice %215 {offsets = [0, 128], sizes = [8, 128], strides = [1, 1]} : vector<8x384xf32> to vector<8x128xf32>
    %226 = arith.addf %224, %225 : vector<8x128xf32>
    %227 = arith.negf %226 : vector<8x128xf32>
    %228 = math.exp %227 : vector<8x128xf32>
    %cst_64 = arith.constant 1.000000e+00 : f32
    %229 = vector.broadcast %cst_64 : f32 to vector<8x128xf32>
    %230 = arith.addf %229, %228 : vector<8x128xf32>
    %231 = arith.divf %229, %230 : vector<8x128xf32>
    %232 = vector.extract_strided_slice %213 {offsets = [0, 256], sizes = [8, 128], strides = [1, 1]} : vector<8x384xf32> to vector<8x128xf32>
    %233 = vector.extract_strided_slice %215 {offsets = [0, 256], sizes = [8, 128], strides = [1, 1]} : vector<8x384xf32> to vector<8x128xf32>
    %234 = arith.addf %233, %5 : vector<8x128xf32>
    %235 = arith.mulf %223, %234 : vector<8x128xf32>
    %236 = arith.addf %232, %235 : vector<8x128xf32>
    %237 = math.tanh %236 : vector<8x128xf32>
    %238 = arith.subf %206, %237 : vector<8x128xf32>
    %239 = arith.mulf %231, %238 : vector<8x128xf32>
    %240 = arith.addf %237, %239 : vector<8x128xf32>
    %241 = arith.index_cast %c6_i32 : i32 to index
    %c0_65 = arith.constant 0 : index
    %c0_66 = arith.constant 0 : index
    %242 = vector.load %arg6[%241, %c0_65, %c0_66] : memref<8x8x128xf32, #tpu.memory_space<vmem>>, vector<1x8x128xf32>
    %243 = vector.shape_cast %242 : vector<1x8x128xf32> to vector<8x128xf32>
    %244 = vector.shape_cast %240 : vector<8x128xf32> to vector<1x8x128xf32>
    tpu.vector_store %arg6[%241, %c0_65, %c0_66], %244 {strides = array<i32>} : memref<8x8x128xf32, #tpu.memory_space<vmem>>, vector<1x8x128xf32>,
    %c7_i32 = arith.constant 7 : i32
    %245 = arith.index_cast %c7_i32 : i32 to index
    %c0_67 = arith.constant 0 : index
    %c0_68 = arith.constant 0 : index
    %246 = vector.load %arg2[%245, %c0_67, %c0_68] : memref<8x8x384xf32, #tpu.memory_space<vmem>>, vector<1x8x384xf32>
    %247 = vector.shape_cast %246 : vector<1x8x384xf32> to vector<8x384xf32>
    %c0_69 = arith.constant 0 : index
    %c0_70 = arith.constant 0 : index
    %248 = vector.load %arg4[%c0_69, %c0_70] : memref<128x384xf32, #tpu.memory_space<vmem>>, vector<128x384xf32>
    %cst_71 = arith.constant dense<0.000000e+00> : vector<8x384xf32>
    %249 = tpu.matmul %240, %248, %cst_71 {dimension_numbers = #tpu.dot_dimension_numbers<[1], [0], [0], [1], [0, 0, 1, 1], [], []>} : vector<8x128xf32>, vector<128x384xf32>, vector<8x384xf32> -> vector<8x384xf32>
    %250 = vector.extract_strided_slice %247 {offsets = [0, 0], sizes = [8, 128], strides = [1, 1]} : vector<8x384xf32> to vector<8x128xf32>
    %251 = vector.extract_strided_slice %249 {offsets = [0, 0], sizes = [8, 128], strides = [1, 1]} : vector<8x384xf32> to vector<8x128xf32>
    %252 = arith.addf %250, %251 : vector<8x128xf32>
    %253 = arith.negf %252 : vector<8x128xf32>
    %254 = math.exp %253 : vector<8x128xf32>
    %cst_72 = arith.constant 1.000000e+00 : f32
    %255 = vector.broadcast %cst_72 : f32 to vector<8x128xf32>
    %256 = arith.addf %255, %254 : vector<8x128xf32>
    %257 = arith.divf %255, %256 : vector<8x128xf32>
    %258 = vector.extract_strided_slice %247 {offsets = [0, 128], sizes = [8, 128], strides = [1, 1]} : vector<8x384xf32> to vector<8x128xf32>
    %259 = vector.extract_strided_slice %249 {offsets = [0, 128], sizes = [8, 128], strides = [1, 1]} : vector<8x384xf32> to vector<8x128xf32>
    %260 = arith.addf %258, %259 : vector<8x128xf32>
    %261 = arith.negf %260 : vector<8x128xf32>
    %262 = math.exp %261 : vector<8x128xf32>
    %cst_73 = arith.constant 1.000000e+00 : f32
    %263 = vector.broadcast %cst_73 : f32 to vector<8x128xf32>
    %264 = arith.addf %263, %262 : vector<8x128xf32>
    %265 = arith.divf %263, %264 : vector<8x128xf32>
    %266 = vector.extract_strided_slice %247 {offsets = [0, 256], sizes = [8, 128], strides = [1, 1]} : vector<8x384xf32> to vector<8x128xf32>
    %267 = vector.extract_strided_slice %249 {offsets = [0, 256], sizes = [8, 128], strides = [1, 1]} : vector<8x384xf32> to vector<8x128xf32>
    %268 = arith.addf %267, %5 : vector<8x128xf32>
    %269 = arith.mulf %257, %268 : vector<8x128xf32>
    %270 = arith.addf %266, %269 : vector<8x128xf32>
    %271 = math.tanh %270 : vector<8x128xf32>
    %272 = arith.subf %240, %271 : vector<8x128xf32>
    %273 = arith.mulf %265, %272 : vector<8x128xf32>
    %274 = arith.addf %271, %273 : vector<8x128xf32>
    %275 = arith.index_cast %c7_i32 : i32 to index
    %c0_74 = arith.constant 0 : index
    %c0_75 = arith.constant 0 : index
    %276 = vector.load %arg6[%275, %c0_74, %c0_75] : memref<8x8x128xf32, #tpu.memory_space<vmem>>, vector<1x8x128xf32>
    %277 = vector.shape_cast %276 : vector<1x8x128xf32> to vector<8x128xf32>
    %278 = vector.shape_cast %274 : vector<8x128xf32> to vector<1x8x128xf32>
    tpu.vector_store %arg6[%275, %c0_74, %c0_75], %278 {strides = array<i32>} : memref<8x8x128xf32, #tpu.memory_space<vmem>>, vector<1x8x128xf32>,
    %c8_i32 = arith.constant 8 : i32
    %c0_76 = arith.constant 0 : index
    %c0_77 = arith.constant 0 : index
    %279 = vector.load %arg8[%c0_76, %c0_77] : memref<8x128xf32, #tpu.memory_space<vmem>>, vector<8x128xf32>
    tpu.vector_store %arg8[%c0_76, %c0_77], %274 {strides = array<i32>} : memref<8x128xf32, #tpu.memory_space<vmem>>, vector<8x128xf32>,
    %c0_78 = arith.constant 0 : index
    %c0_79 = arith.constant 0 : index
    %280 = vector.load %arg7[%c0_78, %c0_79] : memref<8x128xf32, #tpu.memory_space<vmem>>, vector<8x128xf32>
    tpu.vector_store %arg7[%c0_78, %c0_79], %274 {strides = array<i32>} : memref<8x128xf32, #tpu.memory_space<vmem>>, vector<8x128xf32>,
    return
  }
  func.func @transform_0(%arg0: i32, %arg1: i32) -> (i32, i32, i32) {
    %c0_i32 = arith.constant 0 : i32
    %c0_i32_0 = arith.constant 0 : i32
    return %arg1, %arg0, %c0_i32 : i32, i32, i32
  }
  func.func @transform_1(%arg0: i32, %arg1: i32) -> (i32, i32) {
    %c0_i32 = arith.constant 0 : i32
    %c0_i32_0 = arith.constant 0 : i32
    return %arg0, %c0_i32 : i32, i32
  }
  func.func @transform_2(%arg0: i32, %arg1: i32) -> (i32, i32) {
    %c0_i32 = arith.constant 0 : i32
    %c0_i32_0 = arith.constant 0 : i32
    %c0_i32_1 = arith.constant 0 : i32
    return %c0_i32, %c0_i32_0 : i32, i32
  }
  func.func @transform_3(%arg0: i32, %arg1: i32) -> (i32, i32) {
    %c0_i32 = arith.constant 0 : i32
    %c0_i32_0 = arith.constant 0 : i32
    %c0_i32_1 = arith.constant 0 : i32
    return %c0_i32, %c0_i32_0 : i32, i32
  }
  func.func @transform_4(%arg0: i32, %arg1: i32) -> (i32, i32, i32) {
    %c0_i32 = arith.constant 0 : i32
    %c0_i32_0 = arith.constant 0 : i32
    return %arg1, %arg0, %c0_i32 : i32, i32, i32
  }
  func.func @transform_5(%arg0: i32, %arg1: i32) -> (i32, i32) {
    %c0_i32 = arith.constant 0 : i32
    %c0_i32_0 = arith.constant 0 : i32
    return %arg0, %c0_i32 : i32, i32
  }
}

</mosaic_0001>

<bundles_post_ra>
// kernel: _gru_seq.1
= control target key start
LH: loop header
LB: loop body
LE: loop exit
PB: predicated region body
PF: predicated region fallthrough
CT: control target
= control target key end

     0   :  { %s2514_s2 = inlined_call_operand.vmem [shape: f32[128,384], index: 2, kind: input, shape index: {}]   ;;  %s2515_s1 = inlined_call_operand.vmem [shape: f32[8,128], index: 1, kind: input, shape index: {}]   ;;  %s2516_s3 = inlined_call_operand.vmem [shape: f32[1,128], index: 3, kind: input, shape index: {}]   ;;  %s2517_s0 = inlined_call_operand.vmem [shape: f32[8,8,384], index: 0, kind: input, shape index: {}]   ;;  %s2518_s4 = inlined_call_operand.vmem [shape: f32[8,8,128], index: 4, kind: output, shape index: {0}]   ;;  %s2519_s5 = inlined_call_operand.vmem [shape: f32[8,128], index: 5, kind: output, shape index: {1}]  }
   0x1   :  { %v1485_v0 = vld [vmem:[%s2514_s2 + $0x168] sm:$0xff]  ;;  %v1490_v1 = vld [vmem:[%s2514_s2 + $0x170] sm:$0xff]  ;;  %v1502_v3 = vld [vmem:[%s2514_s2 + $0x158] sm:$0xff] }
   0x2   :  { %v1495_v2 = vld [vmem:[%s2514_s2 + $0x150] sm:$0xff]  ;;  %81 = vmatpush.msra.mxu0 %v1485_v0  ;;  %101 = vmatpush.msra.mxu1 %v1490_v1  ;;  %v1507_v4 = vld [vmem:[%s2514_s2 + $0x138] sm:$0xff]  ;;  %v1512_v5 = vld [vmem:[%s2514_s2 + $0x140] sm:$0xff] }
   0x3   :  { %241 = vmatpush.msra.mxu3 %v1485_v0  ;;  %v1520_v6 = vld [vmem:[%s2514_s2 + $0x120] sm:$0xff]  ;;  %v1525_v7 = vld [vmem:[%s2514_s2 + $0x128] sm:$0xff]  ;;  %v1538_v9 = vld [vmem:[%s2514_s2 + $0x110] sm:$0xff] }
   0x4   :  { %82 = vmatpush.msra.mxu0 %v1495_v2  ;;  %102 = vmatpush.msra.mxu1 %v1502_v3  ;;  %v1533_v8 = vld [vmem:[%s2514_s2 + $0x108] sm:$0xff]  ;;  %v1546_v10 = vld [vmem:[%s2514_s2 + $0xf0] sm:$0xff]  ;;  %v1551_v11 = vld [vmem:[%s2514_s2 + $0xf8] sm:$0xff] }
   0x5   :  { %242 = vmatpush.msra.mxu3 %v1495_v2  ;;  %v1556_v12 = vld [vmem:[%s2514_s2 + $0x178] sm:$0xff]  ;;  %v1564_v13 = vld [vmem:[%s2514_s2 + $0x160] sm:$0xff]  ;;  %v1583_v16 = vld [vmem:[%s2514_s2 + $0x148] sm:$0xff] }
   0x6   :  { %83 = vmatpush.msra.mxu0 %v1507_v4  ;;  %103 = vmatpush.msra.mxu1 %v1512_v5  ;;  %v1569_v14 = vld [vmem:[%s2514_s2 + $0xd8] sm:$0xff]  ;;  %v1574_v15 = vld [vmem:[%s2514_s2 + $0xe0] sm:$0xff]  ;;  %v1593_v18 = vld [vmem:[%s2514_s2 + $0xc8] sm:$0xff] }
   0x7   :  { %243 = vmatpush.msra.mxu3 %v1507_v4  ;;  %121 = vmatpush.msra.mxu2 %v1556_v12  ;;  %v1588_v17 = vld [vmem:[%s2514_s2 + $0xc0] sm:$0xff]  ;;  %v1602_v19 = vld [vmem:[%s2514_s2 + $0x130] sm:$0xff]  ;;  %v1607_v20 = vld [vmem:[%s2514_s2 + $0xa8] sm:$0xff] }
   0x8   :  { %84 = vmatpush.msra.mxu0 %v1520_v6  ;;  %104 = vmatpush.msra.mxu1 %v1525_v7  ;;  %v1612_v21 = vld [vmem:[%s2514_s2 + $0xb0] sm:$0xff]  ;;  %v1621_v22 = vld [vmem:[%s2514_s2 + $0x118] sm:$0xff]  ;;  %v1640_v25 = vld [vmem:[%s2514_s2 + $0x100] sm:$0xff] }
   0x9   :  { %244 = vmatpush.msra.mxu3 %v1520_v6  ;;  %122 = vmatpush.msra.mxu2 %v1564_v13  ;;  %v1626_v23 = vld [vmem:[%s2514_s2 + $0x90] sm:$0xff]  ;;  %v1631_v24 = vld [vmem:[%s2514_s2 + $0x98] sm:$0xff]  ;;  %v1650_v27 = vld [vmem:[%s2514_s2 + $0x80] sm:$0xff] }
   0xa   :  { %85 = vmatpush.msra.mxu0 %v1533_v8  ;;  %105 = vmatpush.msra.mxu1 %v1538_v9  ;;  %v1645_v26 = vld [vmem:[%s2514_s2 + $0x78] sm:$0xff]  ;;  %v1659_v28 = vld [vmem:[%s2514_s2 + $0xe8] sm:$0xff]  ;;  %v1664_v29 = vld [vmem:[%s2514_s2 + $0x60] sm:$0xff] }
   0xb   :  { %245 = vmatpush.msra.mxu3 %v1533_v8  ;;  %123 = vmatpush.msra.mxu2 %v1583_v16  ;;  %v1669_v30 = vld [vmem:[%s2514_s2 + $0x68] sm:$0xff]  ;;  %v1678_v31 = vld [vmem:[%s2514_s2 + $0xd0] sm:$0xff]  ;;  %v1697_v34 = vld [vmem:[%s2514_s2 + $0xb8] sm:$0xff] }
   0xc   :  { %86 = vmatpush.msra.mxu0 %v1546_v10  ;;  %106 = vmatpush.msra.mxu1 %v1551_v11  ;;  %v1683_v32 = vld [vmem:[%s2514_s2 + $0x48] sm:$0xff]  ;;  %v1688_v33 = vld [vmem:[%s2514_s2 + $0x50] sm:$0xff]  ;;  %v1707_v36 = vld [vmem:[%s2514_s2 + $0x38] sm:$0xff] }
   0xd   :  { %246 = vmatpush.msra.mxu3 %v1546_v10  ;;  %124 = vmatpush.msra.mxu2 %v1602_v19  ;;  %v1702_v35 = vld [vmem:[%s2514_s2 + $0x30] sm:$0xff]  ;;  %v1716_v37 = vld [vmem:[%s2514_s2 + $0xa0] sm:$0xff]  ;;  %v1721_v38 = vld [vmem:[%s2514_s2 + $0x18] sm:$0xff] }
   0xe   :  { %87 = vmatpush.msra.mxu0 %v1569_v14  ;;  %107 = vmatpush.msra.mxu1 %v1574_v15  ;;  %v1726_v39 = vld [vmem:[%s2514_s2 + $0x20] sm:$0xff]  ;;  %v1735_v40 = vld [vmem:[%s2514_s2 + $0x88] sm:$0xff]  ;;  %v1760_v44 = vld [vmem:[%s2514_s2 + $0x70] sm:$0xff] }
   0xf   :  { %247 = vmatpush.msra.mxu3 %v1569_v14  ;;  %125 = vmatpush.msra.mxu2 %v1621_v22  ;;  %v1740_v41 = vld [vmem:[%s2514_s2] sm:$0xff]  ;;  %v1745_v42 = vld [vmem:[%s2514_s2 + $0x8] sm:$0xff]  ;;  %v1770_v45 = vld [vmem:[%s2514_s2 + $0x58] sm:$0xff] }
  0x10   :  { %88 = vmatpush.msra.mxu0 %v1588_v17  ;;  %108 = vmatpush.msra.mxu1 %v1593_v18  ;;  %v1754_v43 = vld [vmem:[%s2515_s1] sm:$0xff]  ;;  %v1786_v47 = vld [vmem:[%s2514_s2 + $0x28] sm:$0xff]  ;;  %v1795_v48 = vld [vmem:[%s2514_s2 + $0x10] sm:$0xff] }
  0x11   :  { %248 = vmatpush.msra.mxu3 %v1588_v17  ;;  %126 = vmatpush.msra.mxu2 %v1640_v25  ;;  %v1777_v46 = vld [vmem:[%s2514_s2 + $0x40] sm:$0xff]  ;;  %v31_v50 = vld [vmem:[%s2517_s0 + $0x8] sm:$0xff] }
  0x12   :  { %89 = vmatpush.msra.mxu0 %v1607_v20  ;;  %109 = vmatpush.msra.mxu1 %v1612_v21  ;;  %v30_v49 = vld [vmem:[%s2517_s0] sm:$0xff] }
  0x13   :  { %249 = vmatpush.msra.mxu3 %v1607_v20  ;;  %127 = vmatpush.msra.mxu2 %v1659_v28 }
  0x14   :  { %90 = vmatpush.msra.mxu0 %v1626_v23  ;;  %110 = vmatpush.msra.mxu1 %v1631_v24 }
  0x15   :  { %250 = vmatpush.msra.mxu3 %v1626_v23  ;;  %128 = vmatpush.msra.mxu2 %v1678_v31 }
  0x16   :  { %91 = vmatpush.msra.mxu0 %v1645_v26  ;;  %111 = vmatpush.msra.mxu1 %v1650_v27 }
  0x17   :  { %251 = vmatpush.msra.mxu3 %v1645_v26  ;;  %129 = vmatpush.msra.mxu2 %v1697_v34 }
  0x18   :  { %92 = vmatpush.msra.mxu0 %v1664_v29  ;;  %112 = vmatpush.msra.mxu1 %v1669_v30 }
  0x19   :  { %252 = vmatpush.msra.mxu3 %v1664_v29  ;;  %130 = vmatpush.msra.mxu2 %v1716_v37 }
  0x1a   :  { %93 = vmatpush.msra.mxu0 %v1683_v32  ;;  %113 = vmatpush.msra.mxu1 %v1688_v33 }
  0x1b   :  { %253 = vmatpush.msra.mxu3 %v1683_v32  ;;  %131 = vmatpush.msra.mxu2 %v1735_v40 }
  0x1c   :  { %94 = vmatpush.msra.mxu0 %v1702_v35  ;;  %114 = vmatpush.msra.mxu1 %v1707_v36 }
  0x1d   :  { %254 = vmatpush.msra.mxu3 %v1702_v35  ;;  %132 = vmatpush.msra.mxu2 %v1760_v44 }
  0x1e   :  { %95 = vmatpush.msra.mxu0 %v1721_v38  ;;  %115 = vmatpush.msra.mxu1 %v1726_v39 }
  0x1f   :  { %255 = vmatpush.msra.mxu3 %v1721_v38  ;;  %133 = vmatpush.msra.mxu2 %v1770_v45 }
  0x20   :  { %96 = vmatpush.msra.mxu0 %v1740_v41  ;;  %116 = vmatpush.msra.mxu1 %v1745_v42 }
  0x21   :  { %97 = vmatmul.f32.vlgmr.msra.gmra.mxu0 %v1754_v43  ;;  %117 = vmatmul.f32.vlgmr.msra.gmra.mxu1 %v1754_v43 }
  0x22   :  { %261 = vmatpush.msrb.mxu0 %v1490_v1  ;;  %281 = vmatpush.msrb.mxu1 %v1556_v12 }
  0x23   :  { %256 = vmatpush.msra.mxu3 %v1740_v41  ;;  %134 = vmatpush.msra.mxu2 %v1777_v46 }
  0x24   :  { %262 = vmatpush.msrb.mxu0 %v1502_v3  ;;  %282 = vmatpush.msrb.mxu1 %v1564_v13 }
  0x25   :  { %422 = vmatpush.msrb.mxu3 %v1490_v1  ;;  %135 = vmatpush.msra.mxu2 %v1786_v47 }
  0x26   :  { %263 = vmatpush.msrb.mxu0 %v1512_v5  ;;  %283 = vmatpush.msrb.mxu1 %v1583_v16 }
  0x27   :  { %423 = vmatpush.msrb.mxu3 %v1502_v3  ;;  %136 = vmatpush.msra.mxu2 %v1795_v48 }
  0x28   :  { %264 = vmatpush.msrb.mxu0 %v1525_v7  ;;  %284 = vmatpush.msrb.mxu1 %v1602_v19 }
  0x29   :  { %424 = vmatpush.msrb.mxu3 %v1512_v5  ;;  %137 = vmatmul.f32.vlgmr.msra.gmra.mxu2 %v1754_v43 }
  0x2a   :  { %265 = vmatpush.msrb.mxu0 %v1538_v9  ;;  %285 = vmatpush.msrb.mxu1 %v1621_v22 }
  0x2b   :  { %402 = vmatpush.msrb.mxu2 %v1485_v0  ;;  %425 = vmatpush.msrb.mxu3 %v1525_v7 }
  0x2c   :  { %266 = vmatpush.msrb.mxu0 %v1551_v11  ;;  %286 = vmatpush.msrb.mxu1 %v1640_v25 }
  0x2d   :  { %403 = vmatpush.msrb.mxu2 %v1495_v2  ;;  %426 = vmatpush.msrb.mxu3 %v1538_v9 }
  0x2e   :  { %267 = vmatpush.msrb.mxu0 %v1574_v15  ;;  %287 = vmatpush.msrb.mxu1 %v1659_v28 }
  0x2f   :  { %404 = vmatpush.msrb.mxu2 %v1507_v4  ;;  %427 = vmatpush.msrb.mxu3 %v1551_v11 }
  0x30   :  { %268 = vmatpush.msrb.mxu0 %v1593_v18  ;;  %288 = vmatpush.msrb.mxu1 %v1678_v31 }
  0x31   :  { %405 = vmatpush.msrb.mxu2 %v1520_v6  ;;  %428 = vmatpush.msrb.mxu3 %v1574_v15 }
  0x32   :  { %269 = vmatpush.msrb.mxu0 %v1612_v21  ;;  %289 = vmatpush.msrb.mxu1 %v1697_v34 }
  0x33   :  { %406 = vmatpush.msrb.mxu2 %v1533_v8  ;;  %429 = vmatpush.msrb.mxu3 %v1593_v18 }
  0x34   :  { %270 = vmatpush.msrb.mxu0 %v1631_v24  ;;  %290 = vmatpush.msrb.mxu1 %v1716_v37 }
  0x35   :  { %407 = vmatpush.msrb.mxu2 %v1546_v10  ;;  %430 = vmatpush.msrb.mxu3 %v1612_v21 }
  0x36   :  { %271 = vmatpush.msrb.mxu0 %v1650_v27  ;;  %291 = vmatpush.msrb.mxu1 %v1735_v40 }
  0x37   :  { %408 = vmatpush.msrb.mxu2 %v1569_v14  ;;  %431 = vmatpush.msrb.mxu3 %v1631_v24 }
  0x38   :  { %272 = vmatpush.msrb.mxu0 %v1669_v30  ;;  %292 = vmatpush.msrb.mxu1 %v1760_v44 }
  0x39   :  { %409 = vmatpush.msrb.mxu2 %v1588_v17  ;;  %432 = vmatpush.msrb.mxu3 %v1650_v27 }
  0x3a   :  { %273 = vmatpush.msrb.mxu0 %v1688_v33  ;;  %293 = vmatpush.msrb.mxu1 %v1770_v45 }
  0x3b   :  { %410 = vmatpush.msrb.mxu2 %v1607_v20  ;;  %433 = vmatpush.msrb.mxu3 %v1669_v30 }
  0x3c   :  { %274 = vmatpush.msrb.mxu0 %v1707_v36  ;;  %294 = vmatpush.msrb.mxu1 %v1777_v46 }
  0x3d   :  { %411 = vmatpush.msrb.mxu2 %v1626_v23  ;;  %434 = vmatpush.msrb.mxu3 %v1688_v33 }
  0x3e   :  { %275 = vmatpush.msrb.mxu0 %v1726_v39  ;;  %295 = vmatpush.msrb.mxu1 %v1786_v47 }
  0x3f   :  { %412 = vmatpush.msrb.mxu2 %v1645_v26  ;;  %435 = vmatpush.msrb.mxu3 %v1707_v36 }
  0x40   :  { %276 = vmatpush.msrb.mxu0 %v1745_v42  ;;  %296 = vmatpush.msrb.mxu1 %v1795_v48 }
  0x41   :  { %413 = vmatpush.msrb.mxu2 %v1664_v29  ;;  %436 = vmatpush.msrb.mxu3 %v1726_v39 }
  0x42   :  { %442 = vmatpush.msra.mxu0 %v1556_v12  ;;  %563 = vmatpush.msra.mxu1 %v1485_v0  ;;  %v1915_v0 = vld [vmem:[%s2516_s3] ss:$0 sm:$0xff] }
  0x43   :  { %414 = vmatpush.msrb.mxu2 %v1683_v32  ;;  %437 = vmatpush.msrb.mxu3 %v1745_v42 }
  0x44   :  { %443 = vmatpush.msra.mxu0 %v1564_v13  ;;  %564 = vmatpush.msra.mxu1 %v1495_v2 }
  0x45   :  { %415 = vmatpush.msrb.mxu2 %v1702_v35 }
  0x46   :  { %444 = vmatpush.msra.mxu0 %v1583_v16  ;;  %565 = vmatpush.msra.mxu1 %v1507_v4 }
  0x47   :  { %416 = vmatpush.msrb.mxu2 %v1721_v38 }
  0x48   :  { %445 = vmatpush.msra.mxu0 %v1602_v19  ;;  %566 = vmatpush.msra.mxu1 %v1520_v6 }
  0x49   :  { %417 = vmatpush.msrb.mxu2 %v1740_v41 }
  0x4a   :  { %446 = vmatpush.msra.mxu0 %v1621_v22  ;;  %567 = vmatpush.msra.mxu1 %v1533_v8 }
  0x4b   :  { %583 = vmatpush.msra.mxu2 %v1490_v1 }
  0x4c   :  { %447 = vmatpush.msra.mxu0 %v1640_v25  ;;  %568 = vmatpush.msra.mxu1 %v1546_v10 }
  0x4d   :  { %584 = vmatpush.msra.mxu2 %v1502_v3 }
  0x4e   :  { %448 = vmatpush.msra.mxu0 %v1659_v28  ;;  %569 = vmatpush.msra.mxu1 %v1569_v14  ;;  %v32_v14 = vld [vmem:[%s2517_s0 + $0x10] sm:$0xff] }
  0x4f   :  { %585 = vmatpush.msra.mxu2 %v1512_v5 }
  0x50   :  { %449 = vmatpush.msra.mxu0 %v1678_v31  ;;  %570 = vmatpush.msra.mxu1 %v1588_v17 }
  0x51   :  { %586 = vmatpush.msra.mxu2 %v1525_v7 }
  0x52   :  { %450 = vmatpush.msra.mxu0 %v1697_v34  ;;  %571 = vmatpush.msra.mxu1 %v1607_v20 }
  0x53   :  { %587 = vmatpush.msra.mxu2 %v1538_v9 }
  0x54   :  { %451 = vmatpush.msra.mxu0 %v1716_v37  ;;  %572 = vmatpush.msra.mxu1 %v1626_v23 }
  0x55   :  { %588 = vmatpush.msra.mxu2 %v1551_v11 }
  0x56   :  { %452 = vmatpush.msra.mxu0 %v1735_v40  ;;  %573 = vmatpush.msra.mxu1 %v1645_v26 }
  0x57   :  { %589 = vmatpush.msra.mxu2 %v1574_v15 }
  0x58   :  { %453 = vmatpush.msra.mxu0 %v1760_v44  ;;  %574 = vmatpush.msra.mxu1 %v1664_v29 }
  0x59   :  { %590 = vmatpush.msra.mxu2 %v1593_v18 }
  0x5a   :  { %454 = vmatpush.msra.mxu0 %v1770_v45  ;;  %575 = vmatpush.msra.mxu1 %v1683_v32 }
  0x5b   :  { %591 = vmatpush.msra.mxu2 %v1612_v21 }
  0x5c   :  { %455 = vmatpush.msra.mxu0 %v1777_v46  ;;  %576 = vmatpush.msra.mxu1 %v1702_v35 }
  0x5d   :  { %592 = vmatpush.msra.mxu2 %v1631_v24 }
  0x5e   :  { %456 = vmatpush.msra.mxu0 %v1786_v47  ;;  %577 = vmatpush.msra.mxu1 %v1721_v38 }
  0x5f   :  { %593 = vmatpush.msra.mxu2 %v1650_v27 }
  0x60   :  { %457 = vmatpush.msra.mxu0 %v1795_v48  ;;  %578 = vmatpush.msra.mxu1 %v1740_v41 }
  0x61   :  { %594 = vmatpush.msra.mxu2 %v1669_v30 }
  0x63   :  { %595 = vmatpush.msra.mxu2 %v1688_v33 }
  0x65   :  { %596 = vmatpush.msra.mxu2 %v1707_v36 }
  0x67   :  { %597 = vmatpush.msra.mxu2 %v1726_v39 }
  0x69   :  { %598 = vmatpush.msra.mxu2 %v1745_v42 }
  0x9e   :  { %v98_v51 = vpop.f32.mrf.mxu0  ;;  %v118_v52 = vpop.f32.mrf.mxu1 }
  0x9f   :  { %v141_v53 = vadd.f32 %v98_v51, %v30_v49  ;;  %v161_v54 = vadd.f32 %v118_v52, %v31_v50 }
  0xa1   :  { %v1326_v55 = vmul.f32 -1.442695, %v141_v53  ;;  %v1327_v56 = vmul.f32 -1.442695, %v161_v54  ;;  %v1330_v54 = vld [vmem:[%s2517_s0 + $0x28] sm:$0xff] }
  0xa3   :  { %1371 = vpow2.f32 %v1326_v55 }
  0xa4   :  { %1373 = vpow2.f32 %v1327_v56 }
  0xa9   :  { %v1372_v57 = vpop.eup %1371 }
  0xaa   :  { %v1374_v58 = vpop.eup %1373  ;;  %v145_v59 = vadd.f32 1.0, %v1372_v57 }
  0xab   :  { %v165_v60 = vadd.f32 1.0, %v1374_v58 }
  0xac   :  { %1375 = vrcp.f32 %v145_v59  ;;  %v138_v3 = vpop.f32.mrf.mxu2  ;;  %v157_v4 = vand.u32 2147483648, %v145_v59  ;;  %v155_v6 = vand.u32 2147483647, %v145_v59  ;;  %vm151_vm1 = vweird.f32 %v145_v59 }
  0xad   :  { %1377 = vrcp.f32 %v165_v60  ;;  %v181_v8 = vadd.f32 %v1915_v0, %v138_v3  ;;  %vm171_vm4 = vweird.f32 %v165_v60  ;;  %v177_v21 = vand.u32 2147483648, %v165_v60 }
  0xae   :  { %v158_v10 = vor.u32 1.1754944e-38, %v157_v4  ;;  %vm156_vm3 = vcmp.eq.f32.partialorder %v155_v6, 8.507059e+37  ;;  %v175_v24 = vand.u32 2147483647, %v165_v60  ;;  %v1335_v6 = vld [vmem:[%s2517_s0 + $0x38] sm:$0xff] }
  0xaf   :  { %v178_v26 = vor.u32 1.1754944e-38, %v177_v21 }
  0xb0   :  { %vm176_vm7 = vcmp.eq.f32.partialorder %v175_v24, 8.507059e+37 }
  0xb2   :  { %v1376_v61 = vpop.eup %1375 }
  0xb3   :  { %v1378_v62 = vpop.eup %1377  ;;  %v147_v63 = vmul.f32 %v1376_v61, %v145_v59  ;;  %vm152_vm0 = vweird.f32 %v1376_v61 }
  0xb4   :  { %v167_v2 = vmul.f32 %v1378_v62, %v165_v60  ;;  %vm153_vm2 = vmor %vm151_vm1, %vm152_vm0  ;;  %vm172_vm5 = vweird.f32 %v1378_v62 }
  0xb5   :  { %v148_v1 = vsub.f32 1.0, %v147_v63  ;;  %vm173_vm6 = vmor %vm171_vm4, %vm172_vm5 }
  0xb6   :  { %v168_v9 = vsub.f32 1.0, %v167_v2 }
  0xb7   :  { %v149_v5 = vmul.f32 %v1376_v61, %v148_v1 }
  0xb8   :  { %v169_v18 = vmul.f32 %v1378_v62, %v168_v9 }
  0xb9   :  { %v150_v7 = vadd.f32 %v1376_v61, %v149_v5  ;;  %v1334_v5 = vld [vmem:[%s2517_s0 + $0x30] sm:$0xff] }
  0xba   :  { %v170_v23 = vadd.f32 %v1378_v62, %v169_v18 }
  0xbb   :  { %v154_v11 = vsel %vm153_vm2, %v1376_v61, %v150_v7 }
  0xbc   :  { %v159_v15 = vsel %vm156_vm3, %v158_v10, %v154_v11  ;;  %v174_v27 = vsel %vm173_vm6, %v1378_v62, %v170_v23 }
  0xbd   :  { %v182_v17 = vmul.f32 %v181_v8, %v159_v15  ;;  %v179_v32 = vsel %vm176_vm7, %v178_v26, %v174_v27 }
  0xbf   :  { %v183_v20 = vadd.f32 %v182_v17, %v32_v14 }
  0xc1   :  { %1379 = vtanh.f32 %v183_v20 }
  0xc7   :  { %v1380_v29 = vpop.eup %1379 }
  0xc8   :  { %v185_v30 = vsub.f32 %v1754_v43, %v1380_v29 }
  0xca   :  { %v186_v33 = vmul.f32 %v185_v30, %v179_v32 }
  0xcc   :  { %v1922_v35 = vadd.f32 %v1380_v29, %v186_v33 }
  0xce   :  { %188 = vst [vmem:[%s2518_s4] sm:$0xff] %v1922_v35  ;;  %257 = vmatmul.f32.vlgmr.msra.gmra.mxu3 %v1922_v35  ;;  %277 = vmatmul.f32.vlgmr.msrb.gmra.mxu0 %v1922_v35 }
  0xcf   :  { %297 = vmatmul.f32.vlgmr.msrb.gmra.mxu1 %v1922_v35  ;;  %603 = vmatpush.msra.mxu3 %v1556_v12  ;;  %v1329_v12 = vld [vmem:[%s2517_s0 + $0x20] sm:$0xff] }
  0xd1   :  { %604 = vmatpush.msra.mxu3 %v1564_v13 }
  0xd3   :  { %605 = vmatpush.msra.mxu3 %v1583_v16 }
  0xd5   :  { %606 = vmatpush.msra.mxu3 %v1602_v19 }
  0xd7   :  { %607 = vmatpush.msra.mxu3 %v1621_v22  ;;  %v1328_v22 = vld [vmem:[%s2517_s0 + $0x18] sm:$0xff] }
  0xd9   :  { %608 = vmatpush.msra.mxu3 %v1640_v25 }
  0xdb   :  { %609 = vmatpush.msra.mxu3 %v1659_v28 }
  0xdd   :  { %610 = vmatpush.msra.mxu3 %v1678_v31 }
  0xdf   :  { %611 = vmatpush.msra.mxu3 %v1697_v34 }
  0xe1   :  { %612 = vmatpush.msra.mxu3 %v1716_v37 }
  0xe3   :  { %613 = vmatpush.msra.mxu3 %v1735_v40 }
  0xe5   :  { %614 = vmatpush.msra.mxu3 %v1760_v44 }
  0xe7   :  { %615 = vmatpush.msra.mxu3 %v1770_v45 }
  0xe9   :  { %616 = vmatpush.msra.mxu3 %v1777_v46 }
  0xeb   :  { %617 = vmatpush.msra.mxu3 %v1786_v47 }
  0xed   :  { %618 = vmatpush.msra.mxu3 %v1795_v48 }
 0x14b   :  { %v278_v13 = vpop.f32.mrf.mxu0 }
 0x14c   :  { %v321_v16 = vadd.f32 %v1329_v12, %v278_v13  ;;  %v298_v47 = vpop.f32.mrf.mxu1 }
 0x14d   :  { %v341_v51 = vadd.f32 %v1915_v0, %v298_v47  ;;  %v1988_v47 = vld [vmem:[%s2514_s2 + $0x170] sm:$0xff] }
 0x14e   :  { %v1332_v19 = vmul.f32 -1.442695, %v321_v16  ;;  %744 = vmatpush.msrb.mxu1 %v1988_v47 }
 0x150   :  { %1381 = vpow2.f32 %v1332_v19 }
 0x151   :  { %v258_v25 = vpop.f32.mrf.mxu3 }
 0x152   :  { %v301_v28 = vadd.f32 %v1328_v22, %v258_v25  ;;  %v1336_v25 = vld [vmem:[%s2517_s0 + $0x40] sm:$0xff] }
 0x154   :  { %v1331_v31 = vmul.f32 -1.442695, %v301_v28 }
 0x156   :  { %1383 = vpow2.f32 %v1331_v31  ;;  %v1382_v34 = vpop.eup %1381 }
 0x157   :  { %v325_v37 = vadd.f32 1.0, %v1382_v34 }
 0x159   :  { %v337_v59 = vand.u32 2147483648, %v325_v37  ;;  %vm331_vm13 = vweird.f32 %v325_v37  ;;  %v335_v60 = vand.u32 2147483647, %v325_v37 }
 0x15b   :  { %v338_v63 = vor.u32 1.1754944e-38, %v337_v59  ;;  %vm336_vm15 = vcmp.eq.f32.partialorder %v335_v60, 8.507059e+37  ;;  %v2063_v59 = vld [vmem:[%s2514_s2 + $0x110] sm:$0xff]  ;;  %v2068_v60 = vld [vmem:[%s2514_s2 + $0x118] sm:$0xff] }
 0x15c   :  { %v1384_v36 = vpop.eup %1383 }
 0x15d   :  { %v305_v38 = vadd.f32 1.0, %v1384_v36 }
 0x15f   :  { %1385 = vrcp.f32 %v305_v38  ;;  %v317_v44 = vand.u32 2147483648, %v305_v38  ;;  %v315_v46 = vand.u32 2147483647, %v305_v38  ;;  %vm311_vm9 = vweird.f32 %v305_v38 }
 0x160   :  { %1387 = vrcp.f32 %v325_v37 }
 0x161   :  { %v318_v50 = vor.u32 1.1754944e-38, %v317_v44  ;;  %vm316_vm11 = vcmp.eq.f32.partialorder %v315_v46, 8.507059e+37  ;;  %v1983_v46 = vld [vmem:[%s2514_s2 + $0x168] sm:$0xff] }
 0x162   :  { %724 = vmatpush.msrb.mxu0 %v1983_v46 }
 0x165   :  { %v1386_v39 = vpop.eup %1385 }
 0x166   :  { %v1388_v40 = vpop.eup %1387  ;;  %v307_v41 = vmul.f32 %v1386_v39, %v305_v38  ;;  %vm312_vm8 = vweird.f32 %v1386_v39 }
 0x167   :  { %v327_v43 = vmul.f32 %v1388_v40, %v325_v37  ;;  %vm313_vm10 = vmor %vm311_vm9, %vm312_vm8  ;;  %vm332_vm12 = vweird.f32 %v1388_v40 }
 0x168   :  { %v308_v42 = vsub.f32 1.0, %v307_v41  ;;  %vm333_vm14 = vmor %vm331_vm13, %vm332_vm12 }
 0x169   :  { %v328_v49 = vsub.f32 1.0, %v327_v43 }
 0x16a   :  { %v309_v45 = vmul.f32 %v1386_v39, %v308_v42 }
 0x16b   :  { %v329_v56 = vmul.f32 %v1388_v40, %v328_v49  ;;  %v2001_v49 = vld [vmem:[%s2514_s2 + $0x150] sm:$0xff] }
 0x16c   :  { %v310_v48 = vadd.f32 %v1386_v39, %v309_v45  ;;  %725 = vmatpush.msrb.mxu0 %v2001_v49 }
 0x16d   :  { %v330_v58 = vadd.f32 %v1388_v40, %v329_v56  ;;  %v2044_v56 = vld [vmem:[%s2514_s2 + $0x128] sm:$0xff] }
 0x16e   :  { %v314_v52 = vsel %vm313_vm10, %v1386_v39, %v310_v48  ;;  %v1993_v48 = vld [vmem:[%s2514_s2 + $0x178] sm:$0xff] }
 0x16f   :  { %v319_v53 = vsel %vm316_vm11, %v318_v50, %v314_v52  ;;  %v334_v61 = vsel %vm333_vm14, %v1388_v40, %v330_v58  ;;  %v2006_v50 = vld [vmem:[%s2514_s2 + $0x158] sm:$0xff]  ;;  %v2058_v58 = vld [vmem:[%s2514_s2 + $0x108] sm:$0xff] }
 0x170   :  { %v342_v55 = vmul.f32 %v341_v51, %v319_v53  ;;  %v339_v2 = vsel %vm336_vm15, %v338_v63, %v334_v61  ;;  %v2011_v51 = vld [vmem:[%s2514_s2 + $0x160] sm:$0xff]  ;;  %745 = vmatpush.msrb.mxu1 %v2006_v50  ;;  %v2020_v52 = vld [vmem:[%s2514_s2 + $0x138] sm:$0xff]  ;;  %v2077_v61 = vld [vmem:[%s2514_s2 + $0xf0] sm:$0xff] }
 0x171   :  { %v2025_v53 = vld [vmem:[%s2514_s2 + $0x140] sm:$0xff]  ;;  %726 = vmatpush.msrb.mxu0 %v2020_v52 }
 0x172   :  { %v343_v57 = vadd.f32 %v1330_v54, %v342_v55  ;;  %v2030_v54 = vld [vmem:[%s2514_s2 + $0x148] sm:$0xff]  ;;  %746 = vmatpush.msrb.mxu1 %v2025_v53  ;;  %v2039_v55 = vld [vmem:[%s2514_s2 + $0x120] sm:$0xff] }
 0x173   :  { %727 = vmatpush.msrb.mxu0 %v2039_v55  ;;  %v2087_v63 = vld [vmem:[%s2514_s2 + $0x100] sm:$0xff] }
 0x174   :  { %1389 = vtanh.f32 %v343_v57  ;;  %v2049_v57 = vld [vmem:[%s2514_s2 + $0x130] sm:$0xff]  ;;  %747 = vmatpush.msrb.mxu1 %v2044_v56 }
 0x175   :  { %728 = vmatpush.msrb.mxu0 %v2058_v58 }
 0x176   :  { %748 = vmatpush.msrb.mxu1 %v2063_v59 }
 0x177   :  { %729 = vmatpush.msrb.mxu0 %v2077_v61 }
 0x17a   :  { %v1390_v62 = vpop.eup %1389 }
 0x17b   :  { %v345_v1 = vsub.f32 %v1922_v35, %v1390_v62 }
 0x17d   :  { %v346_v3 = vmul.f32 %v345_v1, %v339_v2  ;;  %v2096_v1 = vld [vmem:[%s2514_s2 + $0xd8] sm:$0xff]  ;;  %v2101_v2 = vld [vmem:[%s2514_s2 + $0xe0] sm:$0xff] }
 0x17e   :  { %730 = vmatpush.msrb.mxu0 %v2096_v1 }
 0x17f   :  { %v347_v4 = vadd.f32 %v1390_v62, %v346_v3  ;;  %v2082_v62 = vld [vmem:[%s2514_s2 + $0xf8] sm:$0xff]  ;;  %v2106_v3 = vld [vmem:[%s2514_s2 + $0xe8] sm:$0xff] }
 0x180   :  { %749 = vmatpush.msrb.mxu1 %v2082_v62 }
 0x181   :  { %1333 = vst [vmem:[%s2518_s4 + $0x8] sm:$0xff] %v347_v4  ;;  %418 = vmatmul.f32.vlgmr.msrb.gmra.mxu2 %v347_v4  ;;  %438 = vmatmul.f32.vlgmr.msrb.gmra.mxu3 %v347_v4 }
 0x182   :  { %458 = vmatmul.f32.vlgmr.msra.gmra.mxu0 %v347_v4  ;;  %764 = vmatpush.msrb.mxu2 %v1993_v48 }
 0x183   :  { %885 = vmatpush.msrb.mxu3 %v1983_v46  ;;  %750 = vmatpush.msrb.mxu1 %v2101_v2 }
 0x184   :  { %765 = vmatpush.msrb.mxu2 %v2011_v51 }
 0x185   :  { %886 = vmatpush.msrb.mxu3 %v2001_v49 }
 0x186   :  { %766 = vmatpush.msrb.mxu2 %v2030_v54 }
 0x187   :  { %887 = vmatpush.msrb.mxu3 %v2020_v52 }
 0x188   :  { %767 = vmatpush.msrb.mxu2 %v2049_v57 }
 0x189   :  { %888 = vmatpush.msrb.mxu3 %v2039_v55 }
 0x18a   :  { %768 = vmatpush.msrb.mxu2 %v2068_v60 }
 0x18b   :  { %889 = vmatpush.msrb.mxu3 %v2058_v58 }
 0x18c   :  { %769 = vmatpush.msrb.mxu2 %v2087_v63 }
 0x18d   :  { %890 = vmatpush.msrb.mxu3 %v2077_v61 }
 0x18e   :  { %770 = vmatpush.msrb.mxu2 %v2106_v3 }
 0x18f   :  { %891 = vmatpush.msrb.mxu3 %v2096_v1 }
 0x1ff   :  { %v459_v33 = vpop.f32.mrf.mxu0 }
 0x200   :  { %v502_v16 = vadd.f32 %v1915_v0, %v459_v33  ;;  %v2207_v33 = vld [vmem:[%s2514_s2 + $0x70] sm:$0xff] }
 0x204   :  { %v419_v7 = vpop.f32.mrf.mxu2  ;;  %v439_v8 = vpop.f32.mrf.mxu3 }
 0x205   :  { %v462_v9 = vadd.f32 %v1334_v5, %v419_v7  ;;  %v482_v10 = vadd.f32 %v1335_v6, %v439_v8  ;;  %v2118_v5 = vld [vmem:[%s2514_s2 + $0xc0] sm:$0xff]  ;;  %v2123_v6 = vld [vmem:[%s2514_s2 + $0xc8] sm:$0xff]  ;;  %v2128_v7 = vld [vmem:[%s2514_s2 + $0xd0] sm:$0xff] }
 0x206   :  { %731 = vmatpush.msrb.mxu0 %v2118_v5  ;;  %751 = vmatpush.msrb.mxu1 %v2123_v6 }
 0x207   :  { %v1337_v11 = vmul.f32 -1.442695, %v462_v9  ;;  %v1338_v14 = vmul.f32 -1.442695, %v482_v10  ;;  %771 = vmatpush.msrb.mxu2 %v2128_v7  ;;  %v2137_v10 = vld [vmem:[%s2514_s2 + $0xa8] sm:$0xff]  ;;  %892 = vmatpush.msrb.mxu3 %v2118_v5 }
 0x208   :  { %732 = vmatpush.msrb.mxu0 %v2137_v10 }
 0x209   :  { %1391 = vpow2.f32 %v1337_v11  ;;  %v2142_v11 = vld [vmem:[%s2514_s2 + $0xb0] sm:$0xff]  ;;  %893 = vmatpush.msrb.mxu3 %v2137_v10 }
 0x20a   :  { %1393 = vpow2.f32 %v1338_v14  ;;  %752 = vmatpush.msrb.mxu1 %v2142_v11  ;;  %v2150_v14 = vld [vmem:[%s2514_s2 + $0xb8] sm:$0xff] }
 0x20b   :  { %772 = vmatpush.msrb.mxu2 %v2150_v14 }
 0x20f   :  { %v1392_v15 = vpop.eup %1391 }
 0x210   :  { %v1394_v17 = vpop.eup %1393  ;;  %v466_v18 = vadd.f32 1.0, %v1392_v15 }
 0x211   :  { %v486_v20 = vadd.f32 1.0, %v1394_v17  ;;  %v2156_v17 = vld [vmem:[%s2514_s2 + $0x90] sm:$0xff] }
 0x212   :  { %1395 = vrcp.f32 %v466_v18  ;;  %v478_v27 = vand.u32 2147483648, %v466_v18  ;;  %v476_v32 = vand.u32 2147483647, %v466_v18  ;;  %vm472_vm1 = vweird.f32 %v466_v18  ;;  %733 = vmatpush.msrb.mxu0 %v2156_v17  ;;  %894 = vmatpush.msrb.mxu3 %v2156_v17 }
 0x213   :  { %1397 = vrcp.f32 %v486_v20  ;;  %v498_v37 = vand.u32 2147483648, %v486_v20  ;;  %vm492_vm5 = vweird.f32 %v486_v20  ;;  %v496_v38 = vand.u32 2147483647, %v486_v20 }
 0x214   :  { %v479_v12 = vor.u32 1.1754944e-38, %v478_v27  ;;  %vm477_vm3 = vcmp.eq.f32.partialorder %v476_v32, 8.507059e+37  ;;  %v2202_v32 = vld [vmem:[%s2514_s2 + $0x68] sm:$0xff] }
 0x215   :  { %v499_v41 = vor.u32 1.1754944e-38, %v498_v37  ;;  %vm497_vm7 = vcmp.eq.f32.partialorder %v496_v38, 8.507059e+37  ;;  %v2263_v37 = vld [vmem:[%s2514_s2 + $0x28] sm:$0xff]  ;;  %v2269_v38 = vld [vmem:[%s2514_s2] sm:$0xff] }
 0x218   :  { %v1396_v21 = vpop.eup %1395 }
 0x219   :  { %v1398_v23 = vpop.eup %1397  ;;  %v468_v24 = vmul.f32 %v1396_v21, %v466_v18  ;;  %vm473_vm0 = vweird.f32 %v1396_v21  ;;  %v2161_v18 = vld [vmem:[%s2514_s2 + $0x98] sm:$0xff] }
 0x21a   :  { %v488_v29 = vmul.f32 %v1398_v23, %v486_v20  ;;  %vm474_vm2 = vmor %vm472_vm1, %vm473_vm0  ;;  %vm493_vm4 = vweird.f32 %v1398_v23  ;;  %v2166_v20 = vld [vmem:[%s2514_s2 + $0xa0] sm:$0xff]  ;;  %753 = vmatpush.msrb.mxu1 %v2161_v18 }
 0x21b   :  { %v469_v26 = vsub.f32 1.0, %v468_v24  ;;  %vm494_vm6 = vmor %vm492_vm5, %vm493_vm4  ;;  %773 = vmatpush.msrb.mxu2 %v2166_v20  ;;  %v2183_v24 = vld [vmem:[%s2514_s2 + $0x80] sm:$0xff] }
 0x21c   :  { %v489_v13 = vsub.f32 1.0, %v488_v29  ;;  %754 = vmatpush.msrb.mxu1 %v2183_v24 }
 0x21d   :  { %v470_v30 = vmul.f32 %v1396_v21, %v469_v26  ;;  %v2188_v26 = vld [vmem:[%s2514_s2 + $0x88] sm:$0xff] }
 0x21e   :  { %v490_v31 = vmul.f32 %v1398_v23, %v489_v13  ;;  %774 = vmatpush.msrb.mxu2 %v2188_v26  ;;  %755 = vmatpush.msrb.mxu1 %v2202_v32  ;;  %v2221_v13 = vld [vmem:[%s2514_s2 + $0x50] sm:$0xff] }
 0x21f   :  { %v471_v35 = vadd.f32 %v1396_v21, %v470_v30  ;;  %v2197_v30 = vld [vmem:[%s2514_s2 + $0x60] sm:$0xff] }
 0x220   :  { %v491_v36 = vadd.f32 %v1398_v23, %v490_v31  ;;  %775 = vmatpush.msrb.mxu2 %v2207_v33  ;;  %756 = vmatpush.msrb.mxu1 %v2221_v13  ;;  %v2250_v31 = vld [vmem:[%s2514_s2 + $0x18] sm:$0xff] }
 0x221   :  { %v475_v19 = vsel %vm474_vm2, %v1396_v21, %v471_v35  ;;  %v1341_v21 = vld [vmem:[%s2517_s0 + $0x50] sm:$0xff] }
 0x222   :  { %v480_v22 = vsel %vm477_vm3, %v479_v12, %v475_v19  ;;  %v495_v39 = vsel %vm494_vm6, %v1398_v23, %v491_v36  ;;  %v2178_v23 = vld [vmem:[%s2514_s2 + $0x78] sm:$0xff]  ;;  %v2216_v12 = vld [vmem:[%s2514_s2 + $0x48] sm:$0xff]  ;;  %v2234_v19 = vld [vmem:[%s2514_s2 + $0x30] sm:$0xff] }
 0x223   :  { %v503_v28 = vmul.f32 %v502_v16, %v480_v22  ;;  %v500_v43 = vsel %vm497_vm7, %v499_v41, %v495_v39  ;;  %734 = vmatpush.msrb.mxu0 %v2178_v23  ;;  %895 = vmatpush.msrb.mxu3 %v2178_v23  ;;  %v2226_v16 = vld [vmem:[%s2514_s2 + $0x58] sm:$0xff]  ;;  %v2274_v39 = vld [vmem:[%s2514_s2 + $0x8] sm:$0xff] }
 0x224   :  { %v2239_v22 = vld [vmem:[%s2514_s2 + $0x38] sm:$0xff]  ;;  %776 = vmatpush.msrb.mxu2 %v2226_v16 }
 0x225   :  { %v504_v34 = vadd.f32 %v1336_v25, %v503_v28  ;;  %735 = vmatpush.msrb.mxu0 %v2197_v30  ;;  %896 = vmatpush.msrb.mxu3 %v2197_v30  ;;  %v2244_v25 = vld [vmem:[%s2514_s2 + $0x40] sm:$0xff] }
 0x226   :  { %757 = vmatpush.msrb.mxu1 %v2239_v22  ;;  %777 = vmatpush.msrb.mxu2 %v2244_v25 }
 0x227   :  { %1399 = vtanh.f32 %v504_v34  ;;  %736 = vmatpush.msrb.mxu0 %v2216_v12  ;;  %v2255_v34 = vld [vmem:[%s2514_s2 + $0x20] sm:$0xff]  ;;  %897 = vmatpush.msrb.mxu3 %v2216_v12 }
 0x228   :  { %758 = vmatpush.msrb.mxu1 %v2255_v34  ;;  %778 = vmatpush.msrb.mxu2 %v2263_v37 }
 0x229   :  { %737 = vmatpush.msrb.mxu0 %v2234_v19  ;;  %898 = vmatpush.msrb.mxu3 %v2234_v19 }
 0x22a   :  { %759 = vmatpush.msrb.mxu1 %v2274_v39 }
 0x22b   :  { %738 = vmatpush.msrb.mxu0 %v2250_v31  ;;  %899 = vmatpush.msrb.mxu3 %v2250_v31 }
 0x22d   :  { %v1400_v40 = vpop.eup %1399  ;;  %739 = vmatpush.msrb.mxu0 %v2269_v38  ;;  %900 = vmatpush.msrb.mxu3 %v2269_v38 }
 0x22e   :  { %v506_v42 = vsub.f32 %v347_v4, %v1400_v40  ;;  %v1340_v4 = vld [vmem:[%s2517_s0 + $0x48] sm:$0xff] }
 0x22f   :  { %905 = vmatpush.msra.mxu0 %v1988_v47 }
 0x230   :  { %v507_v44 = vmul.f32 %v506_v42, %v500_v43 }
 0x231   :  { %906 = vmatpush.msra.mxu0 %v2006_v50 }
 0x232   :  { %v1971_v45 = vadd.f32 %v1400_v40, %v507_v44  ;;  %v2282_v40 = vld [vmem:[%s2514_s2 + $0x10] sm:$0xff] }
 0x233   :  { %779 = vmatpush.msrb.mxu2 %v2282_v40  ;;  %907 = vmatpush.msra.mxu0 %v2025_v53 }
 0x234   :  { %1339 = vst [vmem:[%s2518_s4 + $0x10] sm:$0xff] %v1971_v45  ;;  %579 = vmatmul.f32.vlgmr.msra.gmra.mxu1 %v1971_v45  ;;  %599 = vmatmul.f32.vlgmr.msra.gmra.mxu2 %v1971_v45 }
 0x235   :  { %619 = vmatmul.f32.vlgmr.msra.gmra.mxu3 %v1971_v45  ;;  %925 = vmatpush.msra.mxu1 %v1993_v48 }
 0x236   :  { %1046 = vmatpush.msra.mxu2 %v1983_v46  ;;  %1066 = vmatpush.msra.mxu3 %v1988_v47 }
 0x237   :  { %926 = vmatpush.msra.mxu1 %v2011_v51  ;;  %908 = vmatpush.msra.mxu0 %v2044_v56 }
 0x238   :  { %1047 = vmatpush.msra.mxu2 %v2001_v49  ;;  %1067 = vmatpush.msra.mxu3 %v2006_v50 }
 0x239   :  { %927 = vmatpush.msra.mxu1 %v2030_v54  ;;  %909 = vmatpush.msra.mxu0 %v2063_v59 }
 0x23a   :  { %1048 = vmatpush.msra.mxu2 %v2020_v52  ;;  %1068 = vmatpush.msra.mxu3 %v2025_v53 }
 0x23b   :  { %928 = vmatpush.msra.mxu1 %v2049_v57  ;;  %910 = vmatpush.msra.mxu0 %v2082_v62 }
 0x23c   :  { %1049 = vmatpush.msra.mxu2 %v2039_v55  ;;  %1069 = vmatpush.msra.mxu3 %v2044_v56 }
 0x23d   :  { %929 = vmatpush.msra.mxu1 %v2068_v60  ;;  %911 = vmatpush.msra.mxu0 %v2101_v2 }
 0x23e   :  { %1050 = vmatpush.msra.mxu2 %v2058_v58  ;;  %1070 = vmatpush.msra.mxu3 %v2063_v59 }
 0x23f   :  { %930 = vmatpush.msra.mxu1 %v2087_v63  ;;  %912 = vmatpush.msra.mxu0 %v2123_v6 }
 0x240   :  { %1051 = vmatpush.msra.mxu2 %v2077_v61  ;;  %1071 = vmatpush.msra.mxu3 %v2082_v62 }
 0x241   :  { %931 = vmatpush.msra.mxu1 %v2106_v3  ;;  %913 = vmatpush.msra.mxu0 %v2142_v11 }
 0x242   :  { %1052 = vmatpush.msra.mxu2 %v2096_v1  ;;  %1072 = vmatpush.msra.mxu3 %v2101_v2 }
 0x243   :  { %932 = vmatpush.msra.mxu1 %v2128_v7  ;;  %914 = vmatpush.msra.mxu0 %v2161_v18 }
 0x244   :  { %1053 = vmatpush.msra.mxu2 %v2118_v5  ;;  %1073 = vmatpush.msra.mxu3 %v2123_v6 }
 0x245   :  { %933 = vmatpush.msra.mxu1 %v2150_v14  ;;  %915 = vmatpush.msra.mxu0 %v2183_v24 }
 0x246   :  { %1054 = vmatpush.msra.mxu2 %v2137_v10  ;;  %1074 = vmatpush.msra.mxu3 %v2142_v11 }
 0x247   :  { %934 = vmatpush.msra.mxu1 %v2166_v20  ;;  %916 = vmatpush.msra.mxu0 %v2202_v32 }
 0x248   :  { %1055 = vmatpush.msra.mxu2 %v2156_v17  ;;  %1075 = vmatpush.msra.mxu3 %v2161_v18 }
 0x249   :  { %935 = vmatpush.msra.mxu1 %v2188_v26  ;;  %917 = vmatpush.msra.mxu0 %v2221_v13 }
 0x24a   :  { %1056 = vmatpush.msra.mxu2 %v2178_v23  ;;  %1076 = vmatpush.msra.mxu3 %v2183_v24 }
 0x24b   :  { %936 = vmatpush.msra.mxu1 %v2207_v33  ;;  %918 = vmatpush.msra.mxu0 %v2239_v22 }
 0x24c   :  { %1057 = vmatpush.msra.mxu2 %v2197_v30  ;;  %1077 = vmatpush.msra.mxu3 %v2202_v32 }
 0x24d   :  { %937 = vmatpush.msra.mxu1 %v2226_v16  ;;  %919 = vmatpush.msra.mxu0 %v2255_v34 }
 0x24e   :  { %1058 = vmatpush.msra.mxu2 %v2216_v12  ;;  %1078 = vmatpush.msra.mxu3 %v2221_v13 }
 0x24f   :  { %938 = vmatpush.msra.mxu1 %v2244_v25  ;;  %920 = vmatpush.msra.mxu0 %v2274_v39 }
 0x250   :  { %1059 = vmatpush.msra.mxu2 %v2234_v19  ;;  %1079 = vmatpush.msra.mxu3 %v2239_v22 }
 0x251   :  { %939 = vmatpush.msra.mxu1 %v2263_v37 }
 0x252   :  { %1060 = vmatpush.msra.mxu2 %v2250_v31  ;;  %1080 = vmatpush.msra.mxu3 %v2255_v34 }
 0x253   :  { %940 = vmatpush.msra.mxu1 %v2282_v40 }
 0x254   :  { %1061 = vmatpush.msra.mxu2 %v2269_v38  ;;  %1081 = vmatpush.msra.mxu3 %v2274_v39 }
 0x2b1   :  { %v580_v8 = vpop.f32.mrf.mxu1 }
 0x2b2   :  { %v623_v9 = vadd.f32 %v1340_v4, %v580_v8 }
 0x2b4   :  { %v1343_v15 = vmul.f32 -1.442695, %v623_v9 }
 0x2b6   :  { %1401 = vpow2.f32 %v1343_v15 }
 0x2b7   :  { %v600_v27 = vpop.f32.mrf.mxu2 }
 0x2b8   :  { %v643_v29 = vadd.f32 %v1341_v21, %v600_v27  ;;  %v620_v27 = vpop.f32.mrf.mxu3 }
 0x2ba   :  { %v1344_v35 = vmul.f32 -1.442695, %v643_v29 }
 0x2bc   :  { %v1402_v28 = vpop.eup %1401  ;;  %1403 = vpow2.f32 %v1344_v35 }
 0x2bd   :  { %v627_v36 = vadd.f32 1.0, %v1402_v28 }
 0x2bf   :  { %1405 = vrcp.f32 %v627_v36  ;;  %v639_v8 = vand.u32 2147483648, %v627_v36  ;;  %v637_v15 = vand.u32 2147483647, %v627_v36  ;;  %vm633_vm9 = vweird.f32 %v627_v36 }
 0x2c1   :  { %v640_v28 = vor.u32 1.1754944e-38, %v639_v8  ;;  %vm638_vm11 = vcmp.eq.f32.partialorder %v637_v15, 8.507059e+37 }
 0x2c2   :  { %v1404_v41 = vpop.eup %1403 }
 0x2c3   :  { %v2290_v42 = vadd.f32 1.0, %v1404_v41 }
 0x2c5   :  { %v1406_v43 = vpop.eup %1405  ;;  %1407 = vrcp.f32 %v2290_v42  ;;  %vm653_vm13 = vweird.f32 %v2290_v42 }
 0x2c6   :  { %v629_v44 = vmul.f32 %v1406_v43, %v627_v36  ;;  %vm634_vm8 = vweird.f32 %v1406_v43  ;;  %v1342_v36 = vld [vmem:[%s2517_s0 + $0x58] sm:$0xff] }
 0x2c7   :  { %vm635_vm10 = vmor %vm633_vm9, %vm634_vm8 }
 0x2c8   :  { %v630_v4 = vsub.f32 1.0, %v629_v44 }
 0x2ca   :  { %v631_v9 = vmul.f32 %v1406_v43, %v630_v4  ;;  %v663_v4 = vadd.f32 %v1915_v0, %v620_v27 }
 0x2cb   :  { %v2309_v21 = vpop.eup %1407 }
 0x2cc   :  { %v649_v29 = vmul.f32 %v2309_v21, %v2290_v42  ;;  %v632_v35 = vadd.f32 %v1406_v43, %v631_v9  ;;  %vm654_vm12 = vweird.f32 %v2309_v21 }
 0x2cd   :  { %vm655_vm14 = vmor %vm653_vm13, %vm654_vm12 }
 0x2ce   :  { %v650_v41 = vsub.f32 1.0, %v649_v29  ;;  %v636_v44 = vsel %vm635_vm10, %v1406_v43, %v632_v35  ;;  %v659_v29 = vand.u32 2147483648, %v2290_v42  ;;  %v657_v35 = vand.u32 2147483647, %v2290_v42 }
 0x2cf   :  { %v641_v9 = vsel %vm638_vm11, %v640_v28, %v636_v44 }
 0x2d0   :  { %v664_v8 = vmul.f32 %v663_v4, %v641_v9  ;;  %v651_v43 = vmul.f32 %v2309_v21, %v650_v41  ;;  %v660_v44 = vor.u32 1.1754944e-38, %v659_v29  ;;  %vm658_vm15 = vcmp.eq.f32.partialorder %v657_v35, 8.507059e+37 }
 0x2d2   :  { %v665_v15 = vadd.f32 %v1342_v36, %v664_v8  ;;  %v652_v27 = vadd.f32 %v2309_v21, %v651_v43 }
 0x2d4   :  { %1409 = vtanh.f32 %v665_v15  ;;  %v656_v28 = vsel %vm655_vm14, %v2309_v21, %v652_v27 }
 0x2d5   :  { %v661_v4 = vsel %vm658_vm15, %v660_v44, %v656_v28 }
 0x2da   :  { %v1410_v41 = vpop.eup %1409 }
 0x2db   :  { %v667_v42 = vsub.f32 %v1971_v45, %v1410_v41  ;;  %v1346_v45 = vld [vmem:[%s2517_s0 + $0x60] sm:$0xff] }
 0x2dd   :  { %v668_v21 = vmul.f32 %v667_v42, %v661_v4 }
 0x2df   :  { %v2365_v36 = vadd.f32 %v1410_v41, %v668_v21 }
 0x2e1   :  { %1345 = vst [vmem:[%s2518_s4 + $0x18] sm:$0xff] %v2365_v36  ;;  %740 = vmatmul.f32.vlgmr.msrb.gmra.mxu0 %v2365_v36  ;;  %760 = vmatmul.f32.vlgmr.msrb.gmra.mxu1 %v2365_v36 }
 0x2e2   :  { %780 = vmatmul.f32.vlgmr.msrb.gmra.mxu2 %v2365_v36  ;;  %1086 = vmatpush.msrb.mxu0 %v1993_v48 }
 0x2e3   :  { %1207 = vmatpush.msrb.mxu1 %v1983_v46  ;;  %1227 = vmatpush.msrb.mxu2 %v1988_v47  ;;  %v1347_v46 = vld [vmem:[%s2517_s0 + $0x68] sm:$0xff] }
 0x2e4   :  { %1087 = vmatpush.msrb.mxu0 %v2011_v51 }
 0x2e5   :  { %1208 = vmatpush.msrb.mxu1 %v2001_v49  ;;  %1228 = vmatpush.msrb.mxu2 %v2006_v50 }
 0x2e6   :  { %1088 = vmatpush.msrb.mxu0 %v2030_v54 }
 0x2e7   :  { %1209 = vmatpush.msrb.mxu1 %v2020_v52  ;;  %1229 = vmatpush.msrb.mxu2 %v2025_v53 }
 0x2e8   :  { %1089 = vmatpush.msrb.mxu0 %v2049_v57 }
 0x2e9   :  { %1210 = vmatpush.msrb.mxu1 %v2039_v55  ;;  %1230 = vmatpush.msrb.mxu2 %v2044_v56 }
 0x2ea   :  { %1090 = vmatpush.msrb.mxu0 %v2068_v60 }
 0x2eb   :  { %1211 = vmatpush.msrb.mxu1 %v2058_v58  ;;  %1231 = vmatpush.msrb.mxu2 %v2063_v59 }
 0x2ec   :  { %1091 = vmatpush.msrb.mxu0 %v2087_v63 }
 0x2ed   :  { %1212 = vmatpush.msrb.mxu1 %v2077_v61  ;;  %1232 = vmatpush.msrb.mxu2 %v2082_v62 }
 0x2ee   :  { %1092 = vmatpush.msrb.mxu0 %v2106_v3 }
 0x2ef   :  { %1213 = vmatpush.msrb.mxu1 %v2096_v1  ;;  %1233 = vmatpush.msrb.mxu2 %v2101_v2 }
 0x2f0   :  { %1093 = vmatpush.msrb.mxu0 %v2128_v7 }
 0x2f1   :  { %1214 = vmatpush.msrb.mxu1 %v2118_v5  ;;  %1234 = vmatpush.msrb.mxu2 %v2123_v6 }
 0x2f2   :  { %1094 = vmatpush.msrb.mxu0 %v2150_v14 }
 0x2f3   :  { %1215 = vmatpush.msrb.mxu1 %v2137_v10  ;;  %1235 = vmatpush.msrb.mxu2 %v2142_v11 }
 0x2f4   :  { %1095 = vmatpush.msrb.mxu0 %v2166_v20 }
 0x2f5   :  { %1216 = vmatpush.msrb.mxu1 %v2156_v17  ;;  %1236 = vmatpush.msrb.mxu2 %v2161_v18 }
 0x2f6   :  { %1096 = vmatpush.msrb.mxu0 %v2188_v26 }
 0x2f7   :  { %1217 = vmatpush.msrb.mxu1 %v2178_v23  ;;  %1237 = vmatpush.msrb.mxu2 %v2183_v24 }
 0x2f8   :  { %1097 = vmatpush.msrb.mxu0 %v2207_v33 }
 0x2f9   :  { %1218 = vmatpush.msrb.mxu1 %v2197_v30  ;;  %1238 = vmatpush.msrb.mxu2 %v2202_v32 }
 0x2fa   :  { %1098 = vmatpush.msrb.mxu0 %v2226_v16 }
 0x2fb   :  { %1219 = vmatpush.msrb.mxu1 %v2216_v12  ;;  %1239 = vmatpush.msrb.mxu2 %v2221_v13  ;;  %v1348_v13 = vld [vmem:[%s2517_s0 + $0x70] sm:$0xff] }
 0x2fc   :  { %1099 = vmatpush.msrb.mxu0 %v2244_v25 }
 0x2fd   :  { %1220 = vmatpush.msrb.mxu1 %v2234_v19  ;;  %1240 = vmatpush.msrb.mxu2 %v2239_v22 }
 0x2fe   :  { %1100 = vmatpush.msrb.mxu0 %v2263_v37 }
 0x2ff   :  { %1221 = vmatpush.msrb.mxu1 %v2250_v31  ;;  %1241 = vmatpush.msrb.mxu2 %v2255_v34 }
 0x300   :  { %1101 = vmatpush.msrb.mxu0 %v2282_v40 }
 0x301   :  { %1222 = vmatpush.msrb.mxu1 %v2269_v38  ;;  %1242 = vmatpush.msrb.mxu2 %v2274_v39 }
 0x35e   :  { %v741_v47 = vpop.f32.mrf.mxu0  ;;  %v761_v49 = vpop.f32.mrf.mxu1 }
 0x35f   :  { %v784_v50 = vadd.f32 %v1346_v45, %v741_v47  ;;  %v804_v52 = vadd.f32 %v1347_v46, %v761_v49  ;;  %v2475_v46 = vld [vmem:[%s2516_s3] ss:$0 sm:$0xff] }
 0x361   :  { %v1349_v53 = vmul.f32 -1.442695, %v784_v50  ;;  %v1350_v55 = vmul.f32 -1.442695, %v804_v52  ;;  %v1354_v52 = vld [vmem:[%s2517_s0 + $0x88] sm:$0xff] }
 0x363   :  { %1411 = vpow2.f32 %v1349_v53 }
 0x364   :  { %1413 = vpow2.f32 %v1350_v55 }
 0x365   :  { %v781_v18 = vpop.f32.mrf.mxu2 }
 0x366   :  { %v824_v12 = vadd.f32 %v1915_v0, %v781_v18  ;;  %v1359_v18 = vld [vmem:[%s2517_s0 + $0x98] sm:$0xff] }
 0x369   :  { %v1412_v56 = vpop.eup %1411 }
 0x36a   :  { %v1414_v58 = vpop.eup %1413  ;;  %v788_v59 = vadd.f32 1.0, %v1412_v56 }
 0x36b   :  { %v808_v61 = vadd.f32 1.0, %v1414_v58 }
 0x36c   :  { %1415 = vrcp.f32 %v788_v59  ;;  %v800_v10 = vand.u32 2147483648, %v788_v59  ;;  %v798_v17 = vand.u32 2147483647, %v788_v59  ;;  %vm794_vm1 = vweird.f32 %v788_v59 }
 0x36d   :  { %1417 = vrcp.f32 %v808_v61  ;;  %v820_v39 = vand.u32 2147483648, %v808_v61  ;;  %vm814_vm5 = vweird.f32 %v808_v61  ;;  %v818_v9 = vand.u32 2147483647, %v808_v61 }
 0x36e   :  { %v801_v30 = vor.u32 1.1754944e-38, %v800_v10  ;;  %vm799_vm3 = vcmp.eq.f32.partialorder %v798_v17, 8.507059e+37  ;;  %v1358_v17 = vld [vmem:[%s2517_s0 + $0x90] sm:$0xff] }
 0x36f   :  { %v821_v15 = vor.u32 1.1754944e-38, %v820_v39  ;;  %vm819_vm7 = vcmp.eq.f32.partialorder %v818_v9, 8.507059e+37 }
 0x372   :  { %v1416_v62 = vpop.eup %1415 }
 0x373   :  { %v1418_v1 = vpop.eup %1417  ;;  %v790_v2 = vmul.f32 %v1416_v62, %v788_v59  ;;  %vm795_vm0 = vweird.f32 %v1416_v62 }
 0x374   :  { %v810_v6 = vmul.f32 %v1418_v1, %v808_v61  ;;  %vm796_vm2 = vmor %vm794_vm1, %vm795_vm0  ;;  %vm815_vm4 = vweird.f32 %v1418_v1 }
 0x375   :  { %v791_v5 = vsub.f32 1.0, %v790_v2  ;;  %vm816_vm6 = vmor %vm814_vm5, %vm815_vm4 }
 0x376   :  { %v811_v24 = vsub.f32 1.0, %v810_v6 }
 0x377   :  { %v792_v11 = vmul.f32 %v1416_v62, %v791_v5 }
 0x378   :  { %v812_v31 = vmul.f32 %v1418_v1, %v811_v24 }
 0x379   :  { %v793_v23 = vadd.f32 %v1416_v62, %v792_v11 }
 0x37a   :  { %v813_v38 = vadd.f32 %v1418_v1, %v812_v31 }
 0x37b   :  { %v797_v32 = vsel %vm796_vm2, %v1416_v62, %v793_v23 }
 0x37c   :  { %v802_v19 = vsel %vm799_vm3, %v801_v30, %v797_v32  ;;  %v817_v8 = vsel %vm816_vm6, %v1418_v1, %v813_v38 }
 0x37d   :  { %v825_v22 = vmul.f32 %v824_v12, %v802_v19  ;;  %v822_v27 = vsel %vm819_vm7, %v821_v15, %v817_v8 }
 0x37f   :  { %v826_v34 = vadd.f32 %v1348_v13, %v825_v22 }
 0x381   :  { %1419 = vtanh.f32 %v826_v34 }
 0x387   :  { %v1420_v43 = vpop.eup %1419 }
 0x388   :  { %v828_v0 = vsub.f32 %v2365_v36, %v1420_v43 }
 0x38a   :  { %v829_v29 = vmul.f32 %v828_v0, %v822_v27 }
 0x38c   :  { %v2441_v35 = vadd.f32 %v1420_v43, %v829_v29 }
 0x38e   :  { %1351 = vst [vmem:[%s2518_s4 + $0x20] sm:$0xff] %v2441_v35  ;;  %901 = vmatmul.f32.vlgmr.msrb.gmra.mxu3 %v2441_v35  ;;  %921 = vmatmul.f32.vlgmr.msra.gmra.mxu0 %v2441_v35 }
 0x38f   :  { %941 = vmatmul.f32.vlgmr.msra.gmra.mxu1 %v2441_v35  ;;  %1247 = vmatpush.msrb.mxu3 %v1993_v48  ;;  %v1353_v48 = vld [vmem:[%s2517_s0 + $0x80] sm:$0xff] }
 0x391   :  { %1248 = vmatpush.msrb.mxu3 %v2011_v51 }
 0x393   :  { %1249 = vmatpush.msrb.mxu3 %v2030_v54 }
 0x395   :  { %1250 = vmatpush.msrb.mxu3 %v2049_v57 }
 0x397   :  { %1251 = vmatpush.msrb.mxu3 %v2068_v60  ;;  %v1352_v60 = vld [vmem:[%s2517_s0 + $0x78] sm:$0xff] }
 0x399   :  { %1252 = vmatpush.msrb.mxu3 %v2087_v63 }
 0x39b   :  { %1253 = vmatpush.msrb.mxu3 %v2106_v3 }
 0x39d   :  { %1254 = vmatpush.msrb.mxu3 %v2128_v7 }
 0x39f   :  { %1255 = vmatpush.msrb.mxu3 %v2150_v14 }
 0x3a1   :  { %1256 = vmatpush.msrb.mxu3 %v2166_v20 }
 0x3a3   :  { %1257 = vmatpush.msrb.mxu3 %v2188_v26 }
 0x3a5   :  { %1258 = vmatpush.msrb.mxu3 %v2207_v33 }
 0x3a7   :  { %1259 = vmatpush.msrb.mxu3 %v2226_v16 }
 0x3a9   :  { %1260 = vmatpush.msrb.mxu3 %v2244_v25 }
 0x3ab   :  { %1261 = vmatpush.msrb.mxu3 %v2263_v37 }
 0x3ad   :  { %1262 = vmatpush.msrb.mxu3 %v2282_v40 }
 0x40b   :  { %v922_v51 = vpop.f32.mrf.mxu0 }
 0x40c   :  { %v965_v54 = vadd.f32 %v1353_v48, %v922_v51  ;;  %v942_v4 = vpop.f32.mrf.mxu1 }
 0x40d   :  { %v985_v47 = vadd.f32 %v2475_v46, %v942_v4 }
 0x40e   :  { %v1356_v57 = vmul.f32 -1.442695, %v965_v54 }
 0x410   :  { %1421 = vpow2.f32 %v1356_v57 }
 0x411   :  { %v902_v63 = vpop.f32.mrf.mxu3 }
 0x412   :  { %v945_v3 = vadd.f32 %v1352_v60, %v902_v63  ;;  %v1360_v63 = vld [vmem:[%s2517_s0 + $0xa0] sm:$0xff] }
 0x414   :  { %v1355_v7 = vmul.f32 -1.442695, %v945_v3 }
 0x416   :  { %1423 = vpow2.f32 %v1355_v7  ;;  %v1422_v14 = vpop.eup %1421 }
 0x417   :  { %v969_v26 = vadd.f32 1.0, %v1422_v14 }
 0x419   :  { %v981_v59 = vand.u32 2147483648, %v969_v26  ;;  %vm975_vm13 = vweird.f32 %v969_v26  ;;  %v979_v61 = vand.u32 2147483647, %v969_v26 }
 0x41b   :  { %v982_v2 = vor.u32 1.1754944e-38, %v981_v59  ;;  %vm980_vm15 = vcmp.eq.f32.partialorder %v979_v61, 8.507059e+37 }
 0x41c   :  { %v1424_v20 = vpop.eup %1423 }
 0x41d   :  { %v949_v33 = vadd.f32 1.0, %v1424_v20 }
 0x41f   :  { %1425 = vrcp.f32 %v949_v33  ;;  %v961_v41 = vand.u32 2147483648, %v949_v33  ;;  %v959_v42 = vand.u32 2147483647, %v949_v33  ;;  %vm955_vm9 = vweird.f32 %v949_v33 }
 0x420   :  { %1427 = vrcp.f32 %v969_v26 }
 0x421   :  { %v962_v45 = vor.u32 1.1754944e-38, %v961_v41  ;;  %vm960_vm11 = vcmp.eq.f32.partialorder %v959_v42, 8.507059e+37  ;;  %v1364_v42 = vld [vmem:[%s2517_s0 + $0xa8] sm:$0xff] }
 0x425   :  { %v1426_v16 = vpop.eup %1425 }
 0x426   :  { %v1428_v25 = vpop.eup %1427  ;;  %v951_v37 = vmul.f32 %v1426_v16, %v949_v33  ;;  %vm956_vm8 = vweird.f32 %v1426_v16 }
 0x427   :  { %v971_v28 = vmul.f32 %v1428_v25, %v969_v26  ;;  %vm957_vm10 = vmor %vm955_vm9, %vm956_vm8  ;;  %vm976_vm12 = vweird.f32 %v1428_v25 }
 0x428   :  { %v952_v40 = vsub.f32 1.0, %v951_v37  ;;  %vm977_vm14 = vmor %vm975_vm13, %vm976_vm12 }
 0x429   :  { %v972_v36 = vsub.f32 1.0, %v971_v28 }
 0x42a   :  { %v953_v44 = vmul.f32 %v1426_v16, %v952_v40 }
 0x42b   :  { %v973_v55 = vmul.f32 %v1428_v25, %v972_v36 }
 0x42c   :  { %v954_v21 = vadd.f32 %v1426_v16, %v953_v44 }
 0x42d   :  { %v974_v58 = vadd.f32 %v1428_v25, %v973_v55 }
 0x42e   :  { %v958_v49 = vsel %vm957_vm10, %v1426_v16, %v954_v21 }
 0x42f   :  { %v963_v50 = vsel %vm960_vm11, %v962_v45, %v958_v49  ;;  %v978_v62 = vsel %vm977_vm14, %v1428_v25, %v974_v58  ;;  %v1365_v45 = vld [vmem:[%s2517_s0 + $0xb0] sm:$0xff] }
 0x430   :  { %v986_v53 = vmul.f32 %v985_v47, %v963_v50  ;;  %v983_v6 = vsel %vm980_vm15, %v982_v2, %v978_v62 }
 0x432   :  { %v987_v56 = vadd.f32 %v1354_v52, %v986_v53 }
 0x434   :  { %1429 = vtanh.f32 %v987_v56 }
 0x43a   :  { %v1430_v1 = vpop.eup %1429 }
 0x43b   :  { %v989_v5 = vsub.f32 %v2441_v35, %v1430_v1 }
 0x43d   :  { %v990_v10 = vmul.f32 %v989_v5, %v983_v6 }
 0x43f   :  { %v991_v11 = vadd.f32 %v1430_v1, %v990_v10 }
 0x441   :  { %1357 = vst [vmem:[%s2518_s4 + $0x28] sm:$0xff] %v991_v11  ;;  %1062 = vmatmul.f32.vlgmr.msra.gmra.mxu2 %v991_v11  ;;  %1082 = vmatmul.f32.vlgmr.msra.gmra.mxu3 %v991_v11 }
 0x442   :  { %1102 = vmatmul.f32.vlgmr.msrb.gmra.mxu0 %v991_v11 }
 0x4bf   :  { %v1103_v29 = vpop.f32.mrf.mxu0 }
 0x4c0   :  { %v1146_v54 = vadd.f32 %v2475_v46, %v1103_v29 }
 0x4c4   :  { %v1063_v23 = vpop.f32.mrf.mxu2  ;;  %v1083_v24 = vpop.f32.mrf.mxu3 }
 0x4c5   :  { %v1106_v30 = vadd.f32 %v1358_v17, %v1063_v23  ;;  %v1126_v32 = vadd.f32 %v1359_v18, %v1083_v24 }
 0x4c7   :  { %v1361_v12 = vmul.f32 -1.442695, %v1106_v30  ;;  %v1362_v13 = vmul.f32 -1.442695, %v1126_v32  ;;  %v1366_v30 = vld [vmem:[%s2517_s0 + $0xb8] sm:$0xff] }
 0x4c9   :  { %1431 = vpow2.f32 %v1361_v12 }
 0x4ca   :  { %1433 = vpow2.f32 %v1362_v13 }
 0x4cf   :  { %v1432_v19 = vpop.eup %1431 }
 0x4d0   :  { %v1434_v22 = vpop.eup %1433  ;;  %v1110_v31 = vadd.f32 1.0, %v1432_v19 }
 0x4d1   :  { %v1130_v34 = vadd.f32 1.0, %v1434_v22 }
 0x4d2   :  { %1435 = vrcp.f32 %v1110_v31  ;;  %v1122_v43 = vand.u32 2147483648, %v1110_v31  ;;  %v1120_v27 = vand.u32 2147483647, %v1110_v31  ;;  %vm1116_vm1 = vweird.f32 %v1110_v31 }
 0x4d3   :  { %1437 = vrcp.f32 %v1130_v34  ;;  %v1142_v26 = vand.u32 2147483648, %v1130_v34  ;;  %vm1136_vm5 = vweird.f32 %v1130_v34  ;;  %v1140_v33 = vand.u32 2147483647, %v1130_v34 }
 0x4d4   :  { %v1123_v48 = vor.u32 1.1754944e-38, %v1122_v43  ;;  %vm1121_vm3 = vcmp.eq.f32.partialorder %v1120_v27, 8.507059e+37 }
 0x4d5   :  { %v1143_v37 = vor.u32 1.1754944e-38, %v1142_v26  ;;  %vm1141_vm7 = vcmp.eq.f32.partialorder %v1140_v33, 8.507059e+37 }
 0x4d8   :  { %v1436_v38 = vpop.eup %1435 }
 0x4d9   :  { %v1438_v39 = vpop.eup %1437  ;;  %v1112_v9 = vmul.f32 %v1436_v38, %v1110_v31  ;;  %vm1117_vm0 = vweird.f32 %v1436_v38 }
 0x4da   :  { %v1132_v15 = vmul.f32 %v1438_v39, %v1130_v34  ;;  %vm1118_vm2 = vmor %vm1116_vm1, %vm1117_vm0  ;;  %vm1137_vm4 = vweird.f32 %v1438_v39 }
 0x4db   :  { %v1113_v8 = vsub.f32 1.0, %v1112_v9  ;;  %vm1138_vm6 = vmor %vm1136_vm5, %vm1137_vm4 }
 0x4dc   :  { %v1133_v51 = vsub.f32 1.0, %v1132_v15 }
 0x4dd   :  { %v1114_v0 = vmul.f32 %v1436_v38, %v1113_v8 }
 0x4de   :  { %v1134_v7 = vmul.f32 %v1438_v39, %v1133_v51 }
 0x4df   :  { %v1115_v35 = vadd.f32 %v1436_v38, %v1114_v0 }
 0x4e0   :  { %v1135_v20 = vadd.f32 %v1438_v39, %v1134_v7 }
 0x4e1   :  { %v1119_v57 = vsel %vm1118_vm2, %v1436_v38, %v1115_v35 }
 0x4e2   :  { %v1124_v60 = vsel %vm1121_vm3, %v1123_v48, %v1119_v57  ;;  %v1139_v16 = vsel %vm1138_vm6, %v1438_v39, %v1135_v20 }
 0x4e3   :  { %v1147_v3 = vmul.f32 %v1146_v54, %v1124_v60  ;;  %v1144_v28 = vsel %vm1141_vm7, %v1143_v37, %v1139_v16 }
 0x4e5   :  { %v1148_v14 = vadd.f32 %v1360_v63, %v1147_v3 }
 0x4e7   :  { %1439 = vtanh.f32 %v1148_v14 }
 0x4ed   :  { %v1440_v25 = vpop.eup %1439 }
 0x4ee   :  { %v1150_v40 = vsub.f32 %v991_v11, %v1440_v25 }
 0x4f0   :  { %v1151_v41 = vmul.f32 %v1150_v40, %v1144_v28 }
 0x4f2   :  { %v1152_v44 = vadd.f32 %v1440_v25, %v1151_v41 }
 0x4f4   :  { %1363 = vst [vmem:[%s2518_s4 + $0x30] sm:$0xff] %v1152_v44  ;;  %1223 = vmatmul.f32.vlgmr.msrb.gmra.mxu1 %v1152_v44  ;;  %1243 = vmatmul.f32.vlgmr.msrb.gmra.mxu2 %v1152_v44 }
 0x4f5   :  { %1263 = vmatmul.f32.vlgmr.msrb.gmra.mxu3 %v1152_v44 }
 0x571   :  { %v1224_v4 = vpop.f32.mrf.mxu1 }
 0x572   :  { %v1267_v21 = vadd.f32 %v1364_v42, %v1224_v4 }
 0x574   :  { %v1367_v36 = vmul.f32 -1.442695, %v1267_v21 }
 0x576   :  { %1441 = vpow2.f32 %v1367_v36 }
 0x577   :  { %v1244_v47 = vpop.f32.mrf.mxu2 }
 0x578   :  { %v1287_v49 = vadd.f32 %v1365_v45, %v1244_v47  ;;  %v1264_v6 = vpop.f32.mrf.mxu3 }
 0x579   :  { %v1307_v24 = vadd.f32 %v2475_v46, %v1264_v6 }
 0x57a   :  { %v1368_v50 = vmul.f32 -1.442695, %v1287_v49 }
 0x57c   :  { %v1442_v52 = vpop.eup %1441  ;;  %1443 = vpow2.f32 %v1368_v50 }
 0x57d   :  { %v1271_v53 = vadd.f32 1.0, %v1442_v52 }
 0x57f   :  { %1445 = vrcp.f32 %v1271_v53  ;;  %v1283_v62 = vand.u32 2147483648, %v1271_v53  ;;  %v1281_v2 = vand.u32 2147483647, %v1271_v53  ;;  %vm1277_vm9 = vweird.f32 %v1271_v53 }
 0x581   :  { %v1284_v17 = vor.u32 1.1754944e-38, %v1283_v62  ;;  %vm1282_vm11 = vcmp.eq.f32.partialorder %v1281_v2, 8.507059e+37 }
 0x582   :  { %v1444_v55 = vpop.eup %1443 }
 0x583   :  { %v1291_v56 = vadd.f32 1.0, %v1444_v55 }
 0x585   :  { %v1446_v58 = vpop.eup %1445  ;;  %1447 = vrcp.f32 %v1291_v56  ;;  %v1303_v31 = vand.u32 2147483648, %v1291_v56  ;;  %vm1297_vm13 = vweird.f32 %v1291_v56  ;;  %v1301_v34 = vand.u32 2147483647, %v1291_v56 }
 0x586   :  { %v1273_v59 = vmul.f32 %v1446_v58, %v1271_v53  ;;  %vm1278_vm8 = vweird.f32 %v1446_v58 }
 0x587   :  { %vm1279_vm10 = vmor %vm1277_vm9, %vm1278_vm8  ;;  %v1304_v9 = vor.u32 1.1754944e-38, %v1303_v31  ;;  %vm1302_vm15 = vcmp.eq.f32.partialorder %v1301_v34, 8.507059e+37 }
 0x588   :  { %v1274_v61 = vsub.f32 1.0, %v1273_v59 }
 0x58a   :  { %v1275_v1 = vmul.f32 %v1446_v58, %v1274_v61 }
 0x58b   :  { %v1448_v5 = vpop.eup %1447 }
 0x58c   :  { %v1293_v10 = vmul.f32 %v1448_v5, %v1291_v56  ;;  %v1276_v11 = vadd.f32 %v1446_v58, %v1275_v1  ;;  %vm1298_vm12 = vweird.f32 %v1448_v5 }
 0x58d   :  { %vm1299_vm14 = vmor %vm1297_vm13, %vm1298_vm12 }
 0x58e   :  { %v1294_v18 = vsub.f32 1.0, %v1293_v10  ;;  %v1280_v23 = vsel %vm1279_vm10, %v1446_v58, %v1276_v11 }
 0x58f   :  { %v1285_v32 = vsel %vm1282_vm11, %v1284_v17, %v1280_v23 }
 0x590   :  { %v1308_v12 = vmul.f32 %v1307_v24, %v1285_v32  ;;  %v1295_v13 = vmul.f32 %v1448_v5, %v1294_v18 }
 0x592   :  { %v1309_v19 = vadd.f32 %v1366_v30, %v1308_v12  ;;  %v1296_v22 = vadd.f32 %v1448_v5, %v1295_v13 }
 0x594   :  { %1449 = vtanh.f32 %v1309_v19  ;;  %v1300_v38 = vsel %vm1299_vm14, %v1448_v5, %v1296_v22 }
 0x595   :  { %v1305_v8 = vsel %vm1302_vm15, %v1304_v9, %v1300_v38 }
 0x59a   :  { %v1450_v39 = vpop.eup %1449 }
 0x59b   :  { %v1311_v46 = vsub.f32 %v1152_v44, %v1450_v39 }
 0x59d   :  { %v1312_v43 = vmul.f32 %v1311_v46, %v1305_v8 }
 0x59f   :  { %v1313_v15 = vadd.f32 %v1450_v39, %v1312_v43 }
 0x5a1   :  { %1369 = vst [vmem:[%s2518_s4 + $0x38] sm:$0xff] %v1313_v15 }
 0x5a2   :  { %1317 = vst [vmem:[%s2519_s5] sm:$0xff] %v1313_v15 }

</bundles_post_ra>
